<compile_context>
chip_gen: v7x
topology: tpu7x:2x2x1
jax: 0.10.0
libtpu: 0.0.40
codegen_flags: <defaults>
</compile_context>

<pallas_src>
import numpy as np
import jax
import jax.numpy as jnp
from jax.experimental import pallas as pl
from jax.experimental.pallas import tpu as pltpu


# ------------------------------ fused kernel --------------------------------

def fused_net_kernel(x1_ref, rhs1_ref, b1_ref, rhs2_ref, b2_ref,
                     fw1_ref, fb1_ref, fw2_ref, fb2_ref, o_ref):
    # x1_ref  : (24, bt, 140) f32   rows = (s, j) with s = 2*p + dy, j = pooled
    #                               row pair index; lanes = ky*28 + input width
    # rhs1_ref: (140, 256) bf16     banded conv1 weights, cols = (dx_half, pw, c1)
    # b1_ref  : (1, 128)  f32       conv1 bias tiled over pw (120 valid lanes)
    # rhs2_ref: (640, 256) bf16     banded conv2 weights, rows = (ky2, pw, c1)pad
    # b2_ref  : (1, 128)  f32       conv2 bias tiled over px (80 valid lanes)
    # fw1_ref : (512, 50) bf16      fc1 weight, rows = (q, px, c2) padded to 128/q
    # fb1_ref : (1, 50) f32 ; fw2_ref: (50, 10) bf16 ; fb2_ref: (1, 10) f32
    # o_ref   : (bt, 10) f32        log-softmax output
    f32 = jnp.float32
    bf16 = jnp.bfloat16
    bt = o_ref.shape[0]

    # ---- conv1 (5x5) as ONE bf16 matmul, K = 5*28 = 140 (ky folded in lanes) --
    lhs1 = x1_ref[...].reshape(24 * bt, 140).astype(bf16)        # rows (s, j, b)
    acc1 = jnp.dot(lhs1, rhs1_ref[...],
                   preferred_element_type=f32)                   # (24*bt, 256)

    # 2x2 max-pool + bias + relu: dy-pool = max over the s = 2p / 2p+1 row
    # blocks, dx-pool = max of the two 128-lane-aligned column halves.
    n = 6 * bt
    h1 = []
    for p in range(2):
        a = jnp.maximum(acc1[(2 * p) * n:(2 * p + 1) * n, :],
                        acc1[(2 * p + 1) * n:(2 * p + 2) * n, :])
        pooled = jnp.maximum(a[:, :128], a[:, 128:])
        h1.append(jnp.maximum(pooled + b1_ref[...], 0.0).astype(bf16))
    # h1[p]: (6*bt, 128), rows (j, b) with pooled row r = 2*j + p,
    #        lanes = pw*10 + c1 (120 valid, 8 zero-padded).

    # ---- conv2 (5x5) + [dropout2d: id] + 2x2 maxpool + relu ------------------
    # TODO(synk): nn.Dropout2d is identity here (eval-mode semantics).
    # Two bf16 matmuls (one per pool-row offset dy2), K = 5*128 = 640 via a
    # lane-concat of the five 128-lane-aligned ky2 row windows.
    acc2 = []
    for dy2 in range(2):
        pieces = []
        for ky2 in range(5):
            u = dy2 + ky2                       # needed pooled conv1 row = 2q+u
            j0 = u // 2
            pieces.append(h1[u % 2][j0 * bt:(j0 + 4) * bt, :])   # (4*bt, 128)
        lhs2 = jnp.concatenate(pieces, axis=1)                   # (4*bt, 640)
        acc2.append(jnp.dot(lhs2, rhs2_ref[...],
                            preferred_element_type=f32))         # (4*bt, 256)
    a2 = jnp.maximum(acc2[0], acc2[1])                           # pool over dy2
    pooled2 = jnp.maximum(a2[:, :128], a2[:, 128:])              # pool over dx2
    h2 = jnp.maximum(pooled2 + b2_ref[...], 0.0).astype(bf16)
    # h2: (4*bt, 128), rows (q, b), lanes = px*20 + c2 (80 valid, 48 zero-pad).

    # ---- fc1 + relu + [dropout: id] + fc2 + log_softmax ----------------------
    # fc1 as ONE bf16 matmul, K = 4*128 = 512 (q folded into lanes); fw1 rows
    # were pre-permuted/padded so this equals PyTorch's x.view(-1, 320) @ fc1.T.
    h2f = jnp.concatenate([h2[q * bt:(q + 1) * bt, :] for q in range(4)],
                          axis=1)                                # (bt, 512)
    z1 = jnp.dot(h2f, fw1_ref[...], preferred_element_type=f32) + fb1_ref[...]
    z1 = jnp.maximum(z1, 0.0)                                    # (bt, 50)
    # TODO(synk): F.dropout between fc1 and fc2 is identity (eval-mode semantics).
    z2 = jnp.dot(z1.astype(bf16), fw2_ref[...],
                 preferred_element_type=f32) + fb2_ref[...]      # (bt, 10)

    m = jnp.max(z2, axis=-1, keepdims=True)
    lse = jnp.log(jnp.sum(jnp.exp(z2 - m), axis=-1, keepdims=True)) + m
    o_ref[...] = z2 - lse


# ------------------------------ wrapper --------------------------------------

@jax.jit
def net_forward(x_nchw, p):
    b = x_nchw.shape[0]
    # Batch tile: multiple of 16 (sublane/bf16-pack aligned slices), capped at
    # 64 so a tile fits comfortably inside v5e's 16 MiB scoped VMEM.
    bt = ((b + 15) // 16) * 16 if b <= 64 else 64
    bpad = ((b + bt - 1) // bt) * bt

    x = x_nchw[:, 0].astype(jnp.float32)                 # (b, 28, 28)
    if bpad != b:
        x = jnp.pad(x, ((0, bpad - b), (0, 0), (0, 0)))

    # Stacked-offset, ky-folded, batch-minor layout (free XLA work on HBM):
    #   x1[s*6 + j, bb, ky*28 + w] = x[bb, 4*j + s + ky, w]
    wins = []
    for s in range(4):
        per_ky = [x[:, s + ky: s + ky + 21: 4, :] for ky in range(5)]  # (bpad,6,28)
        wins.append(jnp.concatenate(per_ky, axis=-1))                  # (bpad,6,140)
    x1 = jnp.stack(wins, axis=0)                                       # (4,bpad,6,140)
    x1 = jnp.transpose(x1, (0, 2, 1, 3)).reshape(24, bpad, 140)

    out = pl.pallas_call(
        fused_net_kernel,
        out_shape=jax.ShapeDtypeStruct((bpad, 10), jnp.float32),
        grid=(bpad // bt,),
        in_specs=[
            pl.BlockSpec((24, bt, 140), lambda i: (0, i, 0)),   # input, per tile
            pl.BlockSpec((140, 256), lambda i: (0, 0)),         # weights pinned
            pl.BlockSpec((1, 128), lambda i: (0, 0)),
            pl.BlockSpec((640, 256), lambda i: (0, 0)),
            pl.BlockSpec((1, 128), lambda i: (0, 0)),
            pl.BlockSpec((512, 50), lambda i: (0, 0)),
            pl.BlockSpec((1, 50), lambda i: (0, 0)),
            pl.BlockSpec((50, 10), lambda i: (0, 0)),
            pl.BlockSpec((1, 10), lambda i: (0, 0)),
        ],
        out_specs=pl.BlockSpec((bt, 10), lambda i: (i, 0)),
        compiler_params=pltpu.CompilerParams(
            dimension_semantics=("parallel",),
            vmem_limit_bytes=32 * 1024 * 1024),
    )(x1, p["rhs1"], p["b1"], p["rhs2"], p["b2"],
      p["fw1"], p["fb1"], p["fw2"], p["fb2"])
    return out[:b]


# --------------------------- parameter packing --------------------------------

def pack_params(raw):
    w1 = np.asarray(raw["conv1_w"], np.float32)     # (10, 1, 5, 5)
    b1 = np.asarray(raw["conv1_b"], np.float32)
    w2 = np.asarray(raw["conv2_w"], np.float32)     # (20, 10, 5, 5)
    b2 = np.asarray(raw["conv2_b"], np.float32)
    fc1_w = np.asarray(raw["fc1_w"], np.float32)    # (50, 320)
    fc1_b = np.asarray(raw["fc1_b"], np.float32)
    fc2_w = np.asarray(raw["fc2_w"], np.float32)    # (10, 50)
    fc2_b = np.asarray(raw["fc2_b"], np.float32)

    # conv1: rhs1[ky*28 + wi, dx*128 + pw*10 + c1] = w1[c1, 0, ky, wi-2*pw-dx]
    rhs1 = np.zeros((5, 28, 256), np.float32)
    for ky in range(5):
        for dx in range(2):
            for pw in range(12):
                for kx in range(5):
                    wi = 2 * pw + dx + kx
                    c0 = dx * 128 + pw * 10
                    rhs1[ky, wi, c0:c0 + 10] = w1[:, 0, ky, kx]
    rhs1 = rhs1.reshape(140, 256)
    b1pad = np.zeros((1, 128), np.float32)
    b1pad[0, :120] = np.tile(b1, 12)

    # conv2: rhs2[ky*128 + wi*10 + c1, dx*128 + px*20 + c2] = w2[c2, c1, ky, kx]
    rhs2 = np.zeros((5, 128, 256), np.float32)
    for ky in range(5):
        for dx in range(2):
            for px in range(4):
                for kx in range(5):
                    wi = 2 * px + dx + kx
                    c0 = dx * 128 + px * 20
                    rhs2[ky, wi * 10:(wi + 1) * 10, c0:c0 + 20] = w2[:, :, ky, kx].T
    rhs2 = rhs2.reshape(640, 256)
    b2pad = np.zeros((1, 128), np.float32)
    b2pad[0, :80] = np.tile(b2, 4)

    # fc1: rows permuted/padded so the kernel's (q, px*20+c2) layout matches
    # PyTorch's NCHW x.view(-1, 320) feature order c2*16 + q*4 + px.
    fw1 = np.zeros((512, 50), np.float32)
    for q in range(4):
        for px in range(4):
            for c2 in range(20):
                fw1[q * 128 + px * 20 + c2, :] = fc1_w[:, c2 * 16 + q * 4 + px]

    return {
        "rhs1": jnp.asarray(rhs1, jnp.bfloat16),
        "b1": jnp.asarray(b1pad),
        "rhs2": jnp.asarray(rhs2, jnp.bfloat16),
        "b2": jnp.asarray(b2pad),
        "fw1": jnp.asarray(fw1, jnp.bfloat16),
        "fb1": jnp.asarray(fc1_b[None]),
        "fw2": jnp.asarray(fc2_w.T, jnp.bfloat16),
        "fb2": jnp.asarray(fc2_b[None]),
    }


def init_params(key):
    ks = jax.random.split(key, 8)

    def u(k_, shape, fan_in):
        bound = 1.0 / jnp.sqrt(float(fan_in))
        return jax.random.uniform(k_, shape, jnp.float32, -bound, bound)

    return {
        "conv1_w": u(ks[0], (10, 1, 5, 5), 25), "conv1_b": u(ks[1], (10,), 25),
        "conv2_w": u(ks[2], (20, 10, 5, 5), 250), "conv2_b": u(ks[3], (20,), 250),
        "fc1_w": u(ks[4], (50, 320), 320), "fc1_b": u(ks[5], (50,), 320),
        "fc2_w": u(ks[6], (10, 50), 50), "fc2_b": u(ks[7], (10,), 50),
    }


def reference_forward(x_nchw, raw):
    """Pure-JAX eval-mode reference for numerical sanity check."""
    dn = ("NCHW", "OIHW", "NCHW")
    y = jax.lax.conv_general_dilated(x_nchw, raw["conv1_w"], (1, 1), "VALID",
                                     dimension_numbers=dn, precision="highest")
    y = y + raw["conv1_b"][None, :, None, None]
    bsz, c, h, w = y.shape
    y = jnp.maximum(y.reshape(bsz, c, h // 2, 2, w // 2, 2).max(axis=(3, 5)), 0.0)
    y = jax.lax.conv_general_dilated(y, raw["conv2_w"], (1, 1), "VALID",
                                     dimension_numbers=dn, precision="highest")
    y = y + raw["conv2_b"][None, :, None, None]
    bsz, c, h, w = y.shape
    y = jnp.maximum(y.reshape(bsz, c, h // 2, 2, w // 2, 2).max(axis=(3, 5)), 0.0)
    y = y.reshape(bsz, 320)
    y = jnp.maximum(y @ raw["fc1_w"].T + raw["fc1_b"], 0.0)
    y = y @ raw["fc2_w"].T + raw["fc2_b"]
    return jax.nn.log_softmax(y, axis=1)


if __name__ == "__main__":
    key = jax.random.PRNGKey(0)
    k_x, k_p = jax.random.split(key)
    # fc1 expects 320 = 20*4*4 features -> spatial must be 28x28 (MNIST-style).
    x = jax.random.normal(k_x, (2, 1, 28, 28), dtype=jnp.float32)
    raw = init_params(k_p)
    packed = pack_params(raw)

    out = jax.block_until_ready(net_forward(x, packed))
    ref = jax.block_until_ready(reference_forward(x, raw))

    assert out.shape == (2, 10), out.shape
    assert bool(jnp.all(jnp.isfinite(out)))
    # log_softmax rows must exponentiate to 1
    assert bool(jnp.allclose(jnp.sum(jnp.exp(out), axis=1), 1.0, atol=1e-4))
    assert bool(jnp.allclose(out, ref, rtol=1e-2, atol=1e-2)), (out, ref)
    print("KERNEL_OK")
</pallas_src>

<mosaic_0001>
module attributes {stable_mosaic.version = 11 : i64} {
  func.func @fused_net_kernel(%arg0: i32, %arg1: memref<24x16x140xf32, #tpu.memory_space<vmem>>, %arg2: memref<140x256xbf16, #tpu.memory_space<vmem>>, %arg3: memref<1x128xf32, #tpu.memory_space<vmem>>, %arg4: memref<640x256xbf16, #tpu.memory_space<vmem>>, %arg5: memref<1x128xf32, #tpu.memory_space<vmem>>, %arg6: memref<512x50xbf16, #tpu.memory_space<vmem>>, %arg7: memref<1x50xf32, #tpu.memory_space<vmem>>, %arg8: memref<50x10xbf16, #tpu.memory_space<vmem>>, %arg9: memref<1x10xf32, #tpu.memory_space<vmem>>, %arg10: memref<16x10xf32, #tpu.memory_space<vmem>>) attributes {dimension_semantics = [#tpu.dimension_semantics<parallel>], iteration_bounds = array<i64: 1>, scalar_prefetch = 0 : i64, scratch_operands = 0 : i64, tpu.core_type = #tpu.core_type<tc>, window_params = [{transform_indices = @transform_0, window_bounds = array<i64: 24, 16, 140>}, {pipeline_mode = #tpu.pipeline_mode<synchronous>, transform_indices = @transform_1, window_bounds = array<i64: 140, 256>}, {pipeline_mode = #tpu.pipeline_mode<synchronous>, transform_indices = @transform_2, window_bounds = array<i64: 1, 128>}, {pipeline_mode = #tpu.pipeline_mode<synchronous>, transform_indices = @transform_3, window_bounds = array<i64: 640, 256>}, {pipeline_mode = #tpu.pipeline_mode<synchronous>, transform_indices = @transform_4, window_bounds = array<i64: 1, 128>}, {pipeline_mode = #tpu.pipeline_mode<synchronous>, transform_indices = @transform_5, window_bounds = array<i64: 512, 50>}, {pipeline_mode = #tpu.pipeline_mode<synchronous>, transform_indices = @transform_6, window_bounds = array<i64: 1, 50>}, {pipeline_mode = #tpu.pipeline_mode<synchronous>, transform_indices = @transform_7, window_bounds = array<i64: 50, 10>}, {pipeline_mode = #tpu.pipeline_mode<synchronous>, transform_indices = @transform_8, window_bounds = array<i64: 1, 10>}, {transform_indices = @transform_9, window_bounds = array<i64: 16, 10>}]} {
    %c0 = arith.constant 0 : index
    %c0_0 = arith.constant 0 : index
    %c0_1 = arith.constant 0 : index
    %0 = vector.load %arg1[%c0, %c0_0, %c0_1] : memref<24x16x140xf32, #tpu.memory_space<vmem>>, vector<24x16x140xf32>
    %1 = vector.shape_cast %0 : vector<24x16x140xf32> to vector<384x140xf32>
    %2 = arith.truncf %1 : vector<384x140xf32> to vector<384x140xbf16>
    %c0_2 = arith.constant 0 : index
    %c0_3 = arith.constant 0 : index
    %3 = vector.load %arg2[%c0_2, %c0_3] : memref<140x256xbf16, #tpu.memory_space<vmem>>, vector<140x256xbf16>
    %cst = arith.constant dense<0.000000e+00> : vector<384x256xf32>
    %4 = tpu.matmul %2, %3, %cst {dimension_numbers = #tpu.dot_dimension_numbers<[1], [0], [0], [1], [0, 0, 1, 1], [], []>} : vector<384x140xbf16>, vector<140x256xbf16>, vector<384x256xf32> -> vector<384x256xf32>
    %5 = vector.extract_strided_slice %4 {offsets = [0, 0], sizes = [96, 256], strides = [1, 1]} : vector<384x256xf32> to vector<96x256xf32>
    %6 = vector.extract_strided_slice %4 {offsets = [96, 0], sizes = [96, 256], strides = [1, 1]} : vector<384x256xf32> to vector<96x256xf32>
    %7 = arith.maximumf %5, %6 : vector<96x256xf32>
    %8 = vector.extract_strided_slice %7 {offsets = [0, 0], sizes = [96, 128], strides = [1, 1]} : vector<96x256xf32> to vector<96x128xf32>
    %9 = vector.extract_strided_slice %7 {offsets = [0, 128], sizes = [96, 128], strides = [1, 1]} : vector<96x256xf32> to vector<96x128xf32>
    %10 = arith.maximumf %8, %9 : vector<96x128xf32>
    %c0_4 = arith.constant 0 : index
    %c0_5 = arith.constant 0 : index
    %11 = vector.load %arg3[%c0_4, %c0_5] : memref<1x128xf32, #tpu.memory_space<vmem>>, vector<1x128xf32>
    %12 = vector.broadcast %11 : vector<1x128xf32> to vector<96x128xf32>
    %13 = arith.addf %10, %12 : vector<96x128xf32>
    %cst_6 = arith.constant 0.000000e+00 : f32
    %14 = vector.broadcast %cst_6 : f32 to vector<96x128xf32>
    %15 = arith.maximumf %13, %14 : vector<96x128xf32>
    %16 = arith.truncf %15 : vector<96x128xf32> to vector<96x128xbf16>
    %17 = vector.extract_strided_slice %4 {offsets = [192, 0], sizes = [96, 256], strides = [1, 1]} : vector<384x256xf32> to vector<96x256xf32>
    %18 = vector.extract_strided_slice %4 {offsets = [288, 0], sizes = [96, 256], strides = [1, 1]} : vector<384x256xf32> to vector<96x256xf32>
    %19 = arith.maximumf %17, %18 : vector<96x256xf32>
    %20 = vector.extract_strided_slice %19 {offsets = [0, 0], sizes = [96, 128], strides = [1, 1]} : vector<96x256xf32> to vector<96x128xf32>
    %21 = vector.extract_strided_slice %19 {offsets = [0, 128], sizes = [96, 128], strides = [1, 1]} : vector<96x256xf32> to vector<96x128xf32>
    %22 = arith.maximumf %20, %21 : vector<96x128xf32>
    %c0_7 = arith.constant 0 : index
    %c0_8 = arith.constant 0 : index
    %23 = vector.load %arg3[%c0_7, %c0_8] : memref<1x128xf32, #tpu.memory_space<vmem>>, vector<1x128xf32>
    %24 = vector.broadcast %23 : vector<1x128xf32> to vector<96x128xf32>
    %25 = arith.addf %22, %24 : vector<96x128xf32>
    %cst_9 = arith.constant 0.000000e+00 : f32
    %26 = vector.broadcast %cst_9 : f32 to vector<96x128xf32>
    %27 = arith.maximumf %25, %26 : vector<96x128xf32>
    %28 = arith.truncf %27 : vector<96x128xf32> to vector<96x128xbf16>
    %29 = vector.extract_strided_slice %16 {offsets = [0, 0], sizes = [64, 128], strides = [1, 1]} : vector<96x128xbf16> to vector<64x128xbf16>
    %30 = vector.extract_strided_slice %28 {offsets = [0, 0], sizes = [64, 128], strides = [1, 1]} : vector<96x128xbf16> to vector<64x128xbf16>
    %31 = vector.extract_strided_slice %16 {offsets = [16, 0], sizes = [64, 128], strides = [1, 1]} : vector<96x128xbf16> to vector<64x128xbf16>
    %32 = vector.extract_strided_slice %28 {offsets = [16, 0], sizes = [64, 128], strides = [1, 1]} : vector<96x128xbf16> to vector<64x128xbf16>
    %33 = vector.extract_strided_slice %16 {offsets = [32, 0], sizes = [64, 128], strides = [1, 1]} : vector<96x128xbf16> to vector<64x128xbf16>
    %34 = tpu.concatenate %29, %30, %31, %32, %33 in 1 : vector<64x128xbf16>, vector<64x128xbf16>, vector<64x128xbf16>, vector<64x128xbf16>, vector<64x128xbf16> -> vector<64x640xbf16>
    %c0_10 = arith.constant 0 : index
    %c0_11 = arith.constant 0 : index
    %35 = vector.load %arg4[%c0_10, %c0_11] : memref<640x256xbf16, #tpu.memory_space<vmem>>, vector<640x256xbf16>
    %cst_12 = arith.constant dense<0.000000e+00> : vector<64x256xf32>
    %36 = tpu.matmul %34, %35, %cst_12 {dimension_numbers = #tpu.dot_dimension_numbers<[1], [0], [0], [1], [0, 0, 1, 1], [], []>} : vector<64x640xbf16>, vector<640x256xbf16>, vector<64x256xf32> -> vector<64x256xf32>
    %37 = vector.extract_strided_slice %28 {offsets = [0, 0], sizes = [64, 128], strides = [1, 1]} : vector<96x128xbf16> to vector<64x128xbf16>
    %38 = vector.extract_strided_slice %16 {offsets = [16, 0], sizes = [64, 128], strides = [1, 1]} : vector<96x128xbf16> to vector<64x128xbf16>
    %39 = vector.extract_strided_slice %28 {offsets = [16, 0], sizes = [64, 128], strides = [1, 1]} : vector<96x128xbf16> to vector<64x128xbf16>
    %40 = vector.extract_strided_slice %16 {offsets = [32, 0], sizes = [64, 128], strides = [1, 1]} : vector<96x128xbf16> to vector<64x128xbf16>
    %41 = vector.extract_strided_slice %28 {offsets = [32, 0], sizes = [64, 128], strides = [1, 1]} : vector<96x128xbf16> to vector<64x128xbf16>
    %42 = tpu.concatenate %37, %38, %39, %40, %41 in 1 : vector<64x128xbf16>, vector<64x128xbf16>, vector<64x128xbf16>, vector<64x128xbf16>, vector<64x128xbf16> -> vector<64x640xbf16>
    %c0_13 = arith.constant 0 : index
    %c0_14 = arith.constant 0 : index
    %43 = vector.load %arg4[%c0_13, %c0_14] : memref<640x256xbf16, #tpu.memory_space<vmem>>, vector<640x256xbf16>
    %cst_15 = arith.constant dense<0.000000e+00> : vector<64x256xf32>
    %44 = tpu.matmul %42, %43, %cst_15 {dimension_numbers = #tpu.dot_dimension_numbers<[1], [0], [0], [1], [0, 0, 1, 1], [], []>} : vector<64x640xbf16>, vector<640x256xbf16>, vector<64x256xf32> -> vector<64x256xf32>
    %45 = arith.maximumf %36, %44 : vector<64x256xf32>
    %46 = vector.extract_strided_slice %45 {offsets = [0, 0], sizes = [64, 128], strides = [1, 1]} : vector<64x256xf32> to vector<64x128xf32>
    %47 = vector.extract_strided_slice %45 {offsets = [0, 128], sizes = [64, 128], strides = [1, 1]} : vector<64x256xf32> to vector<64x128xf32>
    %48 = arith.maximumf %46, %47 : vector<64x128xf32>
    %c0_16 = arith.constant 0 : index
    %c0_17 = arith.constant 0 : index
    %49 = vector.load %arg5[%c0_16, %c0_17] : memref<1x128xf32, #tpu.memory_space<vmem>>, vector<1x128xf32>
    %50 = vector.broadcast %49 : vector<1x128xf32> to vector<64x128xf32>
    %51 = arith.addf %48, %50 : vector<64x128xf32>
    %cst_18 = arith.constant 0.000000e+00 : f32
    %52 = vector.broadcast %cst_18 : f32 to vector<64x128xf32>
    %53 = arith.maximumf %51, %52 : vector<64x128xf32>
    %54 = arith.truncf %53 : vector<64x128xf32> to vector<64x128xbf16>
    %55 = vector.extract_strided_slice %54 {offsets = [0, 0], sizes = [16, 128], strides = [1, 1]} : vector<64x128xbf16> to vector<16x128xbf16>
    %56 = vector.extract_strided_slice %54 {offsets = [16, 0], sizes = [16, 128], strides = [1, 1]} : vector<64x128xbf16> to vector<16x128xbf16>
    %57 = vector.extract_strided_slice %54 {offsets = [32, 0], sizes = [16, 128], strides = [1, 1]} : vector<64x128xbf16> to vector<16x128xbf16>
    %58 = vector.extract_strided_slice %54 {offsets = [48, 0], sizes = [16, 128], strides = [1, 1]} : vector<64x128xbf16> to vector<16x128xbf16>
    %59 = tpu.concatenate %55, %56, %57, %58 in 1 : vector<16x128xbf16>, vector<16x128xbf16>, vector<16x128xbf16>, vector<16x128xbf16> -> vector<16x512xbf16>
    %c0_19 = arith.constant 0 : index
    %c0_20 = arith.constant 0 : index
    %60 = vector.load %arg6[%c0_19, %c0_20] : memref<512x50xbf16, #tpu.memory_space<vmem>>, vector<512x50xbf16>
    %cst_21 = arith.constant dense<0.000000e+00> : vector<16x50xf32>
    %61 = tpu.matmul %59, %60, %cst_21 {dimension_numbers = #tpu.dot_dimension_numbers<[1], [0], [0], [1], [0, 0, 1, 1], [], []>} : vector<16x512xbf16>, vector<512x50xbf16>, vector<16x50xf32> -> vector<16x50xf32>
    %c0_22 = arith.constant 0 : index
    %c0_23 = arith.constant 0 : index
    %62 = vector.load %arg7[%c0_22, %c0_23] : memref<1x50xf32, #tpu.memory_space<vmem>>, vector<1x50xf32>
    %63 = vector.broadcast %62 : vector<1x50xf32> to vector<16x50xf32>
    %64 = arith.addf %61, %63 : vector<16x50xf32>
    %cst_24 = arith.constant 0.000000e+00 : f32
    %65 = vector.broadcast %cst_24 : f32 to vector<16x50xf32>
    %66 = arith.maximumf %64, %65 : vector<16x50xf32>
    %67 = arith.truncf %66 : vector<16x50xf32> to vector<16x50xbf16>
    %c0_25 = arith.constant 0 : index
    %c0_26 = arith.constant 0 : index
    %68 = vector.load %arg8[%c0_25, %c0_26] : memref<50x10xbf16, #tpu.memory_space<vmem>>, vector<50x10xbf16>
    %cst_27 = arith.constant dense<0.000000e+00> : vector<16x10xf32>
    %69 = tpu.matmul %67, %68, %cst_27 {dimension_numbers = #tpu.dot_dimension_numbers<[1], [0], [0], [1], [0, 0, 1, 1], [], []>} : vector<16x50xbf16>, vector<50x10xbf16>, vector<16x10xf32> -> vector<16x10xf32>
    %c0_28 = arith.constant 0 : index
    %c0_29 = arith.constant 0 : index
    %70 = vector.load %arg9[%c0_28, %c0_29] : memref<1x10xf32, #tpu.memory_space<vmem>>, vector<1x10xf32>
    %71 = vector.broadcast %70 : vector<1x10xf32> to vector<16x10xf32>
    %72 = arith.addf %69, %71 : vector<16x10xf32>
    %cst_30 = arith.constant dense<0xFF800000> : vector<16xf32>
    %73 = vector.multi_reduction <maximumf>, %72, %cst_30 [1] : vector<16x10xf32> to vector<16xf32>
    %74 = vector.shape_cast %73 : vector<16xf32> to vector<16x1xf32>
    %75 = vector.broadcast %74 : vector<16x1xf32> to vector<16x10xf32>
    %76 = arith.subf %72, %75 : vector<16x10xf32>
    %77 = math.exp %76 : vector<16x10xf32>
    %cst_31 = arith.constant dense<0.000000e+00> : vector<16xf32>
    %78 = vector.multi_reduction <add>, %77, %cst_31 [1] : vector<16x10xf32> to vector<16xf32>
    %79 = vector.shape_cast %78 : vector<16xf32> to vector<16x1xf32>
    %80 = math.log %79 : vector<16x1xf32>
    %81 = arith.addf %80, %74 : vector<16x1xf32>
    %82 = vector.broadcast %81 : vector<16x1xf32> to vector<16x10xf32>
    %83 = arith.subf %72, %82 : vector<16x10xf32>
    %c0_32 = arith.constant 0 : index
    %c0_33 = arith.constant 0 : index
    %84 = vector.load %arg10[%c0_32, %c0_33] : memref<16x10xf32, #tpu.memory_space<vmem>>, vector<16x10xf32>
    tpu.vector_store %arg10[%c0_32, %c0_33], %83 {strides = array<i32>} : memref<16x10xf32, #tpu.memory_space<vmem>>, vector<16x10xf32>,
    return
  }
  func.func @transform_0(%arg0: i32) -> (i32, i32, i32) {
    %c0_i32 = arith.constant 0 : i32
    %c0_i32_0 = arith.constant 0 : i32
    %c0_i32_1 = arith.constant 0 : i32
    return %c0_i32, %arg0, %c0_i32_0 : i32, i32, i32
  }
  func.func @transform_1(%arg0: i32) -> (i32, i32) {
    %c0_i32 = arith.constant 0 : i32
    %c0_i32_0 = arith.constant 0 : i32
    %c0_i32_1 = arith.constant 0 : i32
    return %c0_i32, %c0_i32_0 : i32, i32
  }
  func.func @transform_2(%arg0: i32) -> (i32, i32) {
    %c0_i32 = arith.constant 0 : i32
    %c0_i32_0 = arith.constant 0 : i32
    %c0_i32_1 = arith.constant 0 : i32
    return %c0_i32, %c0_i32_0 : i32, i32
  }
  func.func @transform_3(%arg0: i32) -> (i32, i32) {
    %c0_i32 = arith.constant 0 : i32
    %c0_i32_0 = arith.constant 0 : i32
    %c0_i32_1 = arith.constant 0 : i32
    return %c0_i32, %c0_i32_0 : i32, i32
  }
  func.func @transform_4(%arg0: i32) -> (i32, i32) {
    %c0_i32 = arith.constant 0 : i32
    %c0_i32_0 = arith.constant 0 : i32
    %c0_i32_1 = arith.constant 0 : i32
    return %c0_i32, %c0_i32_0 : i32, i32
  }
  func.func @transform_5(%arg0: i32) -> (i32, i32) {
    %c0_i32 = arith.constant 0 : i32
    %c0_i32_0 = arith.constant 0 : i32
    %c0_i32_1 = arith.constant 0 : i32
    return %c0_i32, %c0_i32_0 : i32, i32
  }
  func.func @transform_6(%arg0: i32) -> (i32, i32) {
    %c0_i32 = arith.constant 0 : i32
    %c0_i32_0 = arith.constant 0 : i32
    %c0_i32_1 = arith.constant 0 : i32
    return %c0_i32, %c0_i32_0 : i32, i32
  }
  func.func @transform_7(%arg0: i32) -> (i32, i32) {
    %c0_i32 = arith.constant 0 : i32
    %c0_i32_0 = arith.constant 0 : i32
    %c0_i32_1 = arith.constant 0 : i32
    return %c0_i32, %c0_i32_0 : i32, i32
  }
  func.func @transform_8(%arg0: i32) -> (i32, i32) {
    %c0_i32 = arith.constant 0 : i32
    %c0_i32_0 = arith.constant 0 : i32
    %c0_i32_1 = arith.constant 0 : i32
    return %c0_i32, %c0_i32_0 : i32, i32
  }
  func.func @transform_9(%arg0: i32) -> (i32, i32) {
    %c0_i32 = arith.constant 0 : i32
    %c0_i32_0 = arith.constant 0 : i32
    return %arg0, %c0_i32 : i32, i32
  }
}

</mosaic_0001>

<bundles_post_ra>
// kernel: net_forward.1
= control target key start
LH: loop header
LB: loop body
LE: loop exit
PB: predicated region body
PF: predicated region fallthrough
CT: control target
= control target key end

     0   :  { %vm283_vm0 = vcmask 97280   ;;  %vm356_vm1 = vcmask 1045504   ;;  %vm2131_vm2 = vcmask 1040384   ;;  %vm2694_vm3 = vmmov 0   ;;  %s4057_s1 = inlined_call_operand.vmem [shape: bf16[140,256], index: 1, kind: input, shape index: {}]   ;;  %s4058_s0 = inlined_call_operand.vmem [shape: f32[24,16,140], index: 0, kind: input, shape index: {}]   ;;  %s4059_s3 = inlined_call_operand.vmem [shape: bf16[640,256], index: 3, kind: input, shape index: {}]   ;;  %s4060_s2 = inlined_call_operand.vmem [shape: f32[1,128], index: 2, kind: input, shape index: {}]   ;;  %s4061_s5 = inlined_call_operand.vmem [shape: bf16[512,50], index: 5, kind: input, shape index: {}]   ;;  %s4062_s4 = inlined_call_operand.vmem [shape: f32[1,128], index: 4, kind: input, shape index: {}]   ;;  %s4063_s7 = inlined_call_operand.vmem [shape: bf16[50,10], index: 7, kind: input, shape index: {}]   ;;  %s4064_s6 = inlined_call_operand.vmem [shape: f32[1,50], index: 6, kind: input, shape index: {}]   ;;  %s4065_s8 = inlined_call_operand.vmem [shape: f32[1,10], index: 8, kind: input, shape index: {}]   ;;  %s4066_s9 = inlined_call_operand.vmem [shape: f32[16,10], index: 9, kind: output, shape index: {}]  }
   0x1   :  { %v2501_v0 = vld [vmem:[%s4057_s1 + $0x4] ss:$8 sps:$4 sm:$0xff]   ;;  %v2503_v1 = vld [vmem:[%s4057_s1] ss:$8 sps:$4 sm:$0xff]   ;;  %v2504_v2 = vld [vmem:[%s4057_s1 + $0x14] ss:$8 sps:$4 sm:$0xff]  }
   0x2   :  { %363 = vmatprep.subr.bf16.mxu0 %v2501_v0  ;;  %v2506_v3 = vld [vmem:[%s4057_s1 + $0x10] ss:$8 sps:$4 sm:$0xff]   ;;  %v2507_v4 = vld [vmem:[%s4057_s1 + $0x24] ss:$8 sps:$4 sm:$0xff]   ;;  %v2509_v5 = vld [vmem:[%s4057_s1 + $0x20] ss:$8 sps:$4 sm:$0xff]  }
   0x3   :  { %364 = vmatpush1.bf16.msra.mxu0 %v2503_v1  ;;  %v2510_v6 = vld [vmem:[%s4057_s1 + $0x34] ss:$8 sps:$4 sm:$0xff]   ;;  %v2512_v7 = vld [vmem:[%s4057_s1 + $0x30] ss:$8 sps:$4 sm:$0xff]   ;;  %v34_v8 = vld [vmem:[%s4058_s0 + $0x8] sm:$0xff]  ;;  %vm2127_vm4 = vcmask 408576  }
   0x4   :  { %365 = vmatprep.subr.bf16.mxu0 %v2504_v2  ;;  %v2513_v9 = vld [vmem:[%s4057_s1 + $0x44] ss:$8 sps:$4 sm:$0xff]   ;;  %v36_v10 = vld [vmem:[%s4058_s0 + $0x18] sm:$0xff]  ;;  %v2515_v12 = vld [vmem:[%s4057_s1 + $0x40] ss:$8 sps:$4 sm:$0xff]   ;;  %vm2176_vm5 = vcmask 80896  }
   0x5   :  { %v130_v11 = vpack.c.bf16 %v36_v10, %v34_v8  ;;  %v2516_v13 = vld [vmem:[%s4057_s1 + $0x54] ss:$8 sps:$4 sm:$0xff]   ;;  %v2518_v14 = vld [vmem:[%s4057_s1 + $0x50] ss:$8 sps:$4 sm:$0xff]   ;;  %v2519_v15 = vld [vmem:[%s4057_s1 + $0x64] ss:$8 sps:$4 sm:$0xff]  }
   0x6   :  { %v2521_v16 = vld [vmem:[%s4057_s1 + $0x60] ss:$8 sps:$4 sm:$0xff]   ;;  %v2522_v17 = vld [vmem:[%s4057_s1 + $0x74] ss:$8 sps:$4 sm:$0xff]   ;;  %v2524_v18 = vld [vmem:[%s4057_s1 + $0x70] ss:$8 sps:$4 sm:$0xff]  }
   0x7   :  { %366 = vmatpush1.bf16.msra.mxu0 %v2506_v3  ;;  %2228 = vmatprep.mubr.msk.bf16.mxu0 %vm283_vm0, %v130_v11  ;;  %v2525_v19 = vld [vmem:[%s4057_s1 + $0x84] ss:$8 sps:$4 sm:$0x3f]   ;;  %v2527_v20 = vld [vmem:[%s4057_s1 + $0x80] ss:$8 sps:$4 sm:$0x3f]  }
   0x8   :  { %367 = vmatprep.subr.bf16.mxu0 %v2507_v4  ;;  %v33_v21 = vld [vmem:[%s4058_s0] sm:$0xff]  ;;  %v35_v22 = vld [vmem:[%s4058_s0 + $0x10] sm:$0xff]  ;;  %v358_v23 = vsel %vm356_vm1, %v2527_v20, 0  ;;  %v38_v24 = vld [vmem:[%s4058_s0 + $0x28] sm:$0xff] }
   0x9   :  { %v40_v25 = vld [vmem:[%s4058_s0 + $0x38] sm:$0xff]  ;;  %v129_v26 = vpack.c.bf16 %v35_v22, %v33_v21  ;;  %v37_v28 = vld [vmem:[%s4058_s0 + $0x20] sm:$0xff]  ;;  %v39_v29 = vld [vmem:[%s4058_s0 + $0x30] sm:$0xff] }
   0xa   :  { %v132_v27 = vpack.c.bf16 %v40_v25, %v38_v24  ;;  %v42_v30 = vld [vmem:[%s4058_s0 + $0x48] sm:$0xff]  ;;  %v44_v31 = vld [vmem:[%s4058_s0 + $0x58] sm:$0xff]  ;;  %v131_v32 = vpack.c.bf16 %v39_v29, %v37_v28  ;;  %v41_v34 = vld [vmem:[%s4058_s0 + $0x40] sm:$0xff] }
   0xb   :  { %368 = vmatpush1.bf16.msra.mxu0 %v2509_v5  ;;  %v134_v33 = vpack.c.bf16 %v44_v31, %v42_v30  ;;  %v43_v35 = vld [vmem:[%s4058_s0 + $0x50] sm:$0xff]  ;;  %v46_v36 = vld [vmem:[%s4058_s0 + $0x68] sm:$0xff]  ;;  %v48_v37 = vld [vmem:[%s4058_s0 + $0x78] sm:$0xff] }
   0xc   :  { %369 = vmatprep.subr.bf16.mxu0 %v2510_v6  ;;  %v133_v38 = vpack.c.bf16 %v43_v35, %v41_v34  ;;  %v136_v39 = vpack.c.bf16 %v48_v37, %v46_v36  ;;  %v45_v40 = vld [vmem:[%s4058_s0 + $0x60] sm:$0xff]  ;;  %v47_v41 = vld [vmem:[%s4058_s0 + $0x70] sm:$0xff]  ;;  %v50_v42 = vld [vmem:[%s4058_s0 + $0x88] sm:$0xff] }
   0xd   :  { %v52_v43 = vld [vmem:[%s4058_s0 + $0x98] sm:$0xff]  ;;  %v135_v44 = vpack.c.bf16 %v47_v41, %v45_v40  ;;  %v49_v46 = vld [vmem:[%s4058_s0 + $0x80] sm:$0xff]  ;;  %v51_v47 = vld [vmem:[%s4058_s0 + $0x90] sm:$0xff] }
   0xe   :  { %v138_v45 = vpack.c.bf16 %v52_v43, %v50_v42  ;;  %v54_v48 = vld [vmem:[%s4058_s0 + $0xa8] sm:$0xff]  ;;  %v56_v49 = vld [vmem:[%s4058_s0 + $0xb8] sm:$0xff]  ;;  %v137_v50 = vpack.c.bf16 %v51_v47, %v49_v46  ;;  %v53_v52 = vld [vmem:[%s4058_s0 + $0xa0] sm:$0xff] }
   0xf   :  { %370 = vmatpush1.bf16.msra.mxu0 %v2512_v7  ;;  %v140_v51 = vpack.c.bf16 %v56_v49, %v54_v48  ;;  %v55_v53 = vld [vmem:[%s4058_s0 + $0xb0] sm:$0xff]  ;;  %v58_v54 = vld [vmem:[%s4058_s0 + $0xc8] sm:$0xff]  ;;  %v60_v55 = vld [vmem:[%s4058_s0 + $0xd8] sm:$0xff] }
  0x10   :  { %371 = vmatprep.subr.bf16.mxu0 %v2513_v9  ;;  %v139_v56 = vpack.c.bf16 %v55_v53, %v53_v52  ;;  %v142_v57 = vpack.c.bf16 %v60_v55, %v58_v54  ;;  %v57_v58 = vld [vmem:[%s4058_s0 + $0xc0] sm:$0xff]  ;;  %v59_v59 = vld [vmem:[%s4058_s0 + $0xd0] sm:$0xff]  ;;  %v62_v60 = vld [vmem:[%s4058_s0 + $0xe8] sm:$0xff] }
  0x11   :  { %v64_v61 = vld [vmem:[%s4058_s0 + $0xf8] sm:$0xff]  ;;  %v141_v62 = vpack.c.bf16 %v59_v59, %v57_v58  ;;  %v61_v0 = vld [vmem:[%s4058_s0 + $0xe0] sm:$0xff]  ;;  %v63_v1 = vld [vmem:[%s4058_s0 + $0xf0] sm:$0xff] }
  0x12   :  { %v144_v63 = vpack.c.bf16 %v64_v61, %v62_v60  ;;  %v66_v2 = vld [vmem:[%s4058_s0 + $0x108] sm:$0xff]  ;;  %v68_v3 = vld [vmem:[%s4058_s0 + $0x118] sm:$0xff]  ;;  %v143_v4 = vpack.c.bf16 %v63_v1, %v61_v0  ;;  %v65_v6 = vld [vmem:[%s4058_s0 + $0x100] sm:$0xff] }
  0x13   :  { %372 = vmatpush1.bf16.msra.mxu0 %v2515_v12  ;;  %v146_v5 = vpack.c.bf16 %v68_v3, %v66_v2  ;;  %v67_v7 = vld [vmem:[%s4058_s0 + $0x110] sm:$0xff]  ;;  %v70_v8 = vld [vmem:[%s4058_s0 + $0x128] sm:$0xff]  ;;  %v72_v9 = vld [vmem:[%s4058_s0 + $0x138] sm:$0xff] }
  0x14   :  { %373 = vmatprep.subr.bf16.mxu0 %v2516_v13  ;;  %v145_v10 = vpack.c.bf16 %v67_v7, %v65_v6  ;;  %v148_v11 = vpack.c.bf16 %v72_v9, %v70_v8  ;;  %v69_v12 = vld [vmem:[%s4058_s0 + $0x120] sm:$0xff]  ;;  %v71_v13 = vld [vmem:[%s4058_s0 + $0x130] sm:$0xff]  ;;  %v78_v20 = vld [vmem:[%s4058_s0 + $0x168] sm:$0xff] }
  0x15   :  { %v80_v21 = vld [vmem:[%s4058_s0 + $0x178] sm:$0xff]  ;;  %v77_v24 = vld [vmem:[%s4058_s0 + $0x160] sm:$0xff]  ;;  %v79_v25 = vld [vmem:[%s4058_s0 + $0x170] sm:$0xff] }
  0x16   :  { %v151_v28 = vpack.c.bf16 %v79_v25, %v77_v24  ;;  %v81_v30 = vld [vmem:[%s4058_s0 + $0x180] sm:$0xff]  ;;  %v83_v31 = vld [vmem:[%s4058_s0 + $0x190] sm:$0xff] }
  0x17   :  { %374 = vmatpush1.bf16.msra.mxu0 %v2518_v14  ;;  %v74_v14 = vld [vmem:[%s4058_s0 + $0x148] sm:$0xff]  ;;  %v153_v34 = vpack.c.bf16 %v83_v31, %v81_v30  ;;  %v85_v36 = vld [vmem:[%s4058_s0 + $0x1a0] sm:$0xff]  ;;  %v87_v37 = vld [vmem:[%s4058_s0 + $0x1b0] sm:$0xff] }
  0x18   :  { %375 = vmatprep.subr.bf16.mxu0 %v2519_v15  ;;  %v76_v15 = vld [vmem:[%s4058_s0 + $0x158] sm:$0xff]  ;;  %v155_v40 = vpack.c.bf16 %v87_v37, %v85_v36  ;;  %v89_v42 = vld [vmem:[%s4058_s0 + $0x1c0] sm:$0xff]  ;;  %v91_v43 = vld [vmem:[%s4058_s0 + $0x1d0] sm:$0xff] }
  0x19   :  { %v157_v46 = vpack.c.bf16 %v91_v43, %v89_v42  ;;  %v93_v48 = vld [vmem:[%s4058_s0 + $0x1e0] sm:$0xff]  ;;  %v95_v49 = vld [vmem:[%s4058_s0 + $0x1f0] sm:$0xff] }
  0x1a   :  { %v159_v52 = vpack.c.bf16 %v95_v49, %v93_v48  ;;  %v97_v54 = vld [vmem:[%s4058_s0 + $0x200] sm:$0xff]  ;;  %v99_v55 = vld [vmem:[%s4058_s0 + $0x210] sm:$0xff] }
  0x1b   :  { %376 = vmatpush1.bf16.msra.mxu0 %v2521_v16  ;;  %v147_v16 = vpack.c.bf16 %v71_v13, %v69_v12  ;;  %v161_v58 = vpack.c.bf16 %v99_v55, %v97_v54  ;;  %v101_v60 = vld [vmem:[%s4058_s0 + $0x220] sm:$0xff]  ;;  %v103_v61 = vld [vmem:[%s4058_s0 + $0x230] sm:$0xff] }
  0x1c   :  { %377 = vmatprep.subr.bf16.mxu0 %v2522_v17  ;;  %v150_v17 = vpack.c.bf16 %v76_v15, %v74_v14  ;;  %v163_v0 = vpack.c.bf16 %v103_v61, %v101_v60  ;;  %v105_v2 = vld [vmem:[%s4058_s0 + $0x240] sm:$0xff]  ;;  %v107_v3 = vld [vmem:[%s4058_s0 + $0x250] sm:$0xff] }
  0x1d   :  { %v165_v6 = vpack.c.bf16 %v107_v3, %v105_v2  ;;  %v109_v8 = vld [vmem:[%s4058_s0 + $0x260] sm:$0xff]  ;;  %v111_v9 = vld [vmem:[%s4058_s0 + $0x270] sm:$0xff] }
  0x1e   :  { %v167_v12 = vpack.c.bf16 %v111_v9, %v109_v8  ;;  %v113_v14 = vld [vmem:[%s4058_s0 + $0x280] sm:$0xff]  ;;  %v115_v15 = vld [vmem:[%s4058_s0 + $0x290] sm:$0xff] }
  0x1f   :  { %378 = vmatpush1.bf16.msra.mxu0 %v2524_v18  ;;  %v73_v18 = vld [vmem:[%s4058_s0 + $0x140] sm:$0xff]  ;;  %v3126_v37 = vld [vmem:[%s4059_s3 + $0x14] ss:$8 sps:$4 sm:$0xff]   ;;  %v3226_v54 = vld [vmem:[%s4059_s3 + $0x50] ss:$8 sps:$4 sm:$0xff]  }
  0x20   :  { %2227 = vmatprep.subr.msk.bf16.mxu0 %vm356_vm1, %v2525_v19  ;;  %v75_v19 = vld [vmem:[%s4058_s0 + $0x150] sm:$0xff]  ;;  %v3153_v42 = vld [vmem:[%s4059_s3 + $0x100] ss:$8 sps:$4 sm:$0xff]   ;;  %v3195_v49 = vld [vmem:[%s4059_s3 + $0x44] ss:$8 sps:$4 sm:$0xff]  }
  0x21   :  { %v149_v22 = vpack.c.bf16 %v75_v19, %v73_v18  ;;  %v169_v18 = vpack.c.bf16 %v115_v15, %v113_v14  ;;  %4119 = vst [vmem:[#allocation3_spill] sm:$0xff] %v3153_v42  ;;  %v3162_v43 = vld [vmem:[%s4059_s3 + $0x114] ss:$8 sps:$4 sm:$0xff]   ;;  %v3190_v48 = vld [vmem:[%s4059_s3 + $0x40] ss:$8 sps:$4 sm:$0xff]  }
  0x22   :  { %4120 = vst [vmem:[#allocation4_spill] sm:$0xff] %v3162_v43  ;;  %v3233_v55 = vld [vmem:[%s4059_s3 + $0x144] ss:$8 sps:$4 sm:$0xff]   ;;  %v3263_v60 = vld [vmem:[%s4059_s3 + $0x74] ss:$8 sps:$4 sm:$0xff]  }
  0x23   :  { %380 = vmatpush1.bf16.msra.mxu0 %v358_v23  ;;  %v152_v23 = vpack.c.bf16 %v80_v21, %v78_v20  ;;  %v117_v20 = vld [vmem:[%s4058_s0 + $0x2a0] sm:$0xff]  ;;  %v119_v21 = vld [vmem:[%s4058_s0 + $0x2b0] sm:$0xff]  ;;  %4126 = vst [vmem:[#allocation10_spill] sm:$0xff] %v3233_v55  ;;  %4129 = vst [vmem:[#allocation13_spill] sm:$0xff] %v3263_v60 }
  0x24   :  { %v171_v24 = vpack.c.bf16 %v119_v21, %v117_v20  ;;  %v3268_v61 = vld [vmem:[%s4059_s3 + $0x150] ss:$8 sps:$4 sm:$0xff]   ;;  %v3297_v2 = vld [vmem:[%s4059_s3 + $0x160] ss:$8 sps:$4 sm:$0xff]  }
  0x25   :  { %4130 = vst [vmem:[#allocation14_spill] sm:$0xff] %v3268_v61  ;;  %4135 = vst [vmem:[#allocation19_spill] sm:$0xff] %v3297_v2  ;;  %v3328_v9 = vld [vmem:[%s4059_s3 + $0x90] ss:$8 sps:$4 sm:$0xff]   ;;  %v3353_v14 = vld [vmem:[%s4059_s3 + $0x180] ss:$8 sps:$4 sm:$0xff]  }
  0x26   :  { %396 = vmatmul.mubr.bf16.vlgmr.msra.gmra.mrb[0].mxu0 %v129_v26  ;;  %v82_v26 = vld [vmem:[%s4058_s0 + $0x188] sm:$0xff]  ;;  %4139 = vst [vmem:[#allocation23_spill] sm:$0xff] %v3328_v9  ;;  %4143 = vst [vmem:[#allocation27_spill] sm:$0xff] %v3353_v14  ;;  %v3384_v21 = vld [vmem:[%s4059_s3 + $0xb0] ss:$8 sps:$4 sm:$0xff]  }
  0x27   :  { %2229 = vmatprep.mubr.msk.bf16.mxu0 %vm283_vm0, %v132_v27  ;;  %v84_v27 = vld [vmem:[%s4058_s0 + $0x198] sm:$0xff]  ;;  %4147 = vst [vmem:[#allocation31_spill] sm:$0xff] %v3384_v21 }
  0x28   :  { %v154_v29 = vpack.c.bf16 %v84_v27, %v82_v26  ;;  %v121_v26 = vld [vmem:[%s4058_s0 + $0x2c0] sm:$0xff]  ;;  %v123_v27 = vld [vmem:[%s4058_s0 + $0x2d0] sm:$0xff] }
  0x29   :  { %v173_v30 = vpack.c.bf16 %v123_v27, %v121_v26  ;;  %v3409_v26 = vld [vmem:[%s4059_s3 + $0x1a0] ss:$8 sps:$4 sm:$0xff]  }
  0x2a   :  { %4151 = vst [vmem:[#allocation35_spill] sm:$0xff] %v3409_v26 }
  0x2e   :  { %406 = vmatmul.mubr.bf16.gmra.mrb[4].mxu0 %v131_v32  ;;  %v86_v32 = vld [vmem:[%s4058_s0 + $0x1a8] sm:$0xff] }
  0x2f   :  { %2230 = vmatprep.mubr.msk.bf16.mxu0 %vm283_vm0, %v134_v33  ;;  %v88_v33 = vld [vmem:[%s4058_s0 + $0x1b8] sm:$0xff] }
  0x30   :  { %v156_v35 = vpack.c.bf16 %v88_v33, %v86_v32  ;;  %v125_v32 = vld [vmem:[%s4058_s0 + $0x2e0] sm:$0xff]  ;;  %v127_v33 = vld [vmem:[%s4058_s0 + $0x2f0] sm:$0xff] }
  0x31   :  { %v175_v36 = vpack.c.bf16 %v127_v33, %v125_v32  ;;  %v3440_v33 = vld [vmem:[%s4059_s3 + $0xd0] ss:$8 sps:$4 sm:$0xff]  }
  0x32   :  { %4155 = vst [vmem:[#allocation39_spill] sm:$0xff] %v3440_v33 }
  0x36   :  { %416 = vmatmul.mubr.bf16.gmra.mrb[8].mxu0 %v133_v38  ;;  %v90_v38 = vld [vmem:[%s4058_s0 + $0x1c8] sm:$0xff] }
  0x37   :  { %2231 = vmatprep.mubr.msk.bf16.mxu0 %vm283_vm0, %v136_v39  ;;  %v92_v39 = vld [vmem:[%s4058_s0 + $0x1d8] sm:$0xff] }
  0x38   :  { %v158_v41 = vpack.c.bf16 %v92_v39, %v90_v38  ;;  %v3131_v38 = vld [vmem:[%s4059_s3 + $0x10] ss:$8 sps:$4 sm:$0xff]   ;;  %v3137_v39 = vld [vmem:[%s4059_s3 + $0x104] ss:$8 sps:$4 sm:$0xff]  }
  0x39   :  { %4118 = vst [vmem:[#allocation2_spill] sm:$0xff] %v3137_v39  ;;  %1328 = vmatprep.subr.bf16.mxu1 %v3137_v39 }
  0x3a   :  { %1329 = vmatpush1.bf16.msra.mxu1 %v3153_v42  ;;  %v3554_v42 = vld [vmem:[%s4060_s2] ss:$0 sm:$0xff] }
  0x3b   :  { %1330 = vmatprep.subr.bf16.mxu1 %v3162_v43 }
  0x3e   :  { %426 = vmatmul.mubr.bf16.gmra.mrb[12].mxu0 %v135_v44  ;;  %v94_v44 = vld [vmem:[%s4058_s0 + $0x1e8] sm:$0xff] }
  0x3f   :  { %2232 = vmatprep.mubr.msk.bf16.mxu0 %vm283_vm0, %v138_v45  ;;  %v96_v45 = vld [vmem:[%s4058_s0 + $0x1f8] sm:$0xff] }
  0x40   :  { %v160_v47 = vpack.c.bf16 %v96_v45, %v94_v44  ;;  %v3167_v44 = vld [vmem:[%s4059_s3 + $0x34] ss:$8 sps:$4 sm:$0xff]   ;;  %v3172_v45 = vld [vmem:[%s4059_s3 + $0x110] ss:$8 sps:$4 sm:$0xff]  }
  0x41   :  { %4121 = vst [vmem:[#allocation5_spill] sm:$0xff] %v3172_v45  ;;  %1331 = vmatpush1.bf16.msra.mxu1 %v3172_v45 }
  0x46   :  { %436 = vmatmul.mubr.bf16.gmra.mrb[16].mxu0 %v137_v50  ;;  %v98_v50 = vld [vmem:[%s4058_s0 + $0x208] sm:$0xff] }
  0x47   :  { %2233 = vmatprep.mubr.msk.bf16.mxu0 %vm283_vm0, %v140_v51  ;;  %v100_v51 = vld [vmem:[%s4058_s0 + $0x218] sm:$0xff] }
  0x48   :  { %v162_v53 = vpack.c.bf16 %v100_v51, %v98_v50  ;;  %v3201_v50 = vld [vmem:[%s4059_s3 + $0x120] ss:$8 sps:$4 sm:$0xff]   ;;  %v3210_v51 = vld [vmem:[%s4059_s3 + $0x134] ss:$8 sps:$4 sm:$0xff]  }
  0x49   :  { %4123 = vst [vmem:[#allocation7_spill] sm:$0xff] %v3201_v50  ;;  %4124 = vst [vmem:[#allocation8_spill] sm:$0xff] %v3210_v51 }
  0x4e   :  { %446 = vmatmul.mubr.bf16.gmra.mrb[20].mxu0 %v139_v56  ;;  %v102_v56 = vld [vmem:[%s4058_s0 + $0x228] sm:$0xff] }
  0x4f   :  { %2234 = vmatprep.mubr.msk.bf16.mxu0 %vm283_vm0, %v142_v57  ;;  %v104_v57 = vld [vmem:[%s4058_s0 + $0x238] sm:$0xff] }
  0x50   :  { %v164_v59 = vpack.c.bf16 %v104_v57, %v102_v56  ;;  %v3238_v56 = vld [vmem:[%s4059_s3 + $0x60] ss:$8 sps:$4 sm:$0xff]   ;;  %v3243_v57 = vld [vmem:[%s4059_s3 + $0x64] ss:$8 sps:$4 sm:$0xff]  }
  0x56   :  { %456 = vmatmul.mubr.bf16.gmra.mrb[24].mxu0 %v141_v62  ;;  %v106_v62 = vld [vmem:[%s4058_s0 + $0x248] sm:$0xff] }
  0x57   :  { %2235 = vmatprep.mubr.msk.bf16.mxu0 %vm283_vm0, %v144_v63  ;;  %v108_v63 = vld [vmem:[%s4058_s0 + $0x258] sm:$0xff] }
  0x58   :  { %v166_v1 = vpack.c.bf16 %v108_v63, %v106_v62  ;;  %v3274_v62 = vld [vmem:[%s4059_s3 + $0x70] ss:$8 sps:$4 sm:$0xff]   ;;  %v3281_v63 = vld [vmem:[%s4059_s3 + $0x164] ss:$8 sps:$4 sm:$0xff]  }
  0x59   :  { %4131 = vst [vmem:[#allocation15_spill] sm:$0xff] %v3274_v62  ;;  %4132 = vst [vmem:[#allocation16_spill] sm:$0xff] %v3281_v63 }
  0x5e   :  { %466 = vmatmul.mubr.bf16.gmra.mrb[28].mxu0 %v143_v4  ;;  %v110_v4 = vld [vmem:[%s4058_s0 + $0x268] sm:$0xff] }
  0x5f   :  { %2236 = vmatprep.mubr.msk.bf16.mxu0 %vm283_vm0, %v146_v5  ;;  %v112_v5 = vld [vmem:[%s4058_s0 + $0x278] sm:$0xff] }
  0x60   :  { %v168_v7 = vpack.c.bf16 %v112_v5, %v110_v4  ;;  %v3308_v4 = vld [vmem:[%s4059_s3 + $0x174] ss:$8 sps:$4 sm:$0xff]  }
  0x61   :  { %4136 = vst [vmem:[#allocation20_spill] sm:$0xff] %v3308_v4 }
  0x66   :  { %476 = vmatmul.mubr.bf16.gmra.mrb[32].mxu0 %v145_v10  ;;  %v114_v10 = vld [vmem:[%s4058_s0 + $0x288] sm:$0xff] }
  0x67   :  { %2237 = vmatprep.mubr.msk.bf16.mxu0 %vm283_vm0, %v148_v11  ;;  %v116_v11 = vld [vmem:[%s4058_s0 + $0x298] sm:$0xff] }
  0x68   :  { %v170_v13 = vpack.c.bf16 %v116_v11, %v114_v10  ;;  %v3337_v11 = vld [vmem:[%s4059_s3 + $0x184] ss:$8 sps:$4 sm:$0xff]  }
  0x69   :  { %4140 = vst [vmem:[#allocation24_spill] sm:$0xff] %v3337_v11 }
  0x6e   :  { %486 = vmatmul.mubr.bf16.gmra.mrb[36].mxu0 %v147_v16  ;;  %v118_v16 = vld [vmem:[%s4058_s0 + $0x2a8] sm:$0xff] }
  0x6f   :  { %2238 = vmatprep.mubr.msk.bf16.mxu0 %vm283_vm0, %v150_v17  ;;  %v120_v17 = vld [vmem:[%s4058_s0 + $0x2b8] sm:$0xff] }
  0x70   :  { %v172_v19 = vpack.c.bf16 %v120_v17, %v118_v16  ;;  %v3364_v16 = vld [vmem:[%s4059_s3 + $0x194] ss:$8 sps:$4 sm:$0xff]  }
  0x71   :  { %4144 = vst [vmem:[#allocation28_spill] sm:$0xff] %v3364_v16 }
  0x76   :  { %496 = vmatmul.mubr.bf16.gmra.mrb[40].mxu0 %v149_v22  ;;  %v122_v22 = vld [vmem:[%s4058_s0 + $0x2c8] sm:$0xff] }
  0x77   :  { %2239 = vmatprep.mubr.msk.bf16.mxu0 %vm283_vm0, %v152_v23  ;;  %v124_v23 = vld [vmem:[%s4058_s0 + $0x2d8] sm:$0xff] }
  0x78   :  { %v174_v25 = vpack.c.bf16 %v124_v23, %v122_v22  ;;  %v3393_v23 = vld [vmem:[%s4059_s3 + $0x1a4] ss:$8 sps:$4 sm:$0xff]  }
  0x79   :  { %4148 = vst [vmem:[#allocation32_spill] sm:$0xff] %v3393_v23 }
  0x7e   :  { %506 = vmatmul.mubr.bf16.gmra.mrb[44].mxu0 %v151_v28  ;;  %v126_v28 = vld [vmem:[%s4058_s0 + $0x2e8] sm:$0xff] }
  0x7f   :  { %2240 = vmatprep.mubr.msk.bf16.mxu0 %vm283_vm0, %v154_v29  ;;  %v128_v29 = vld [vmem:[%s4058_s0 + $0x2f8] sm:$0xff] }
  0x80   :  { %v176_v31 = vpack.c.bf16 %v128_v29, %v126_v28  ;;  %v3420_v28 = vld [vmem:[%s4059_s3 + $0x1b4] ss:$8 sps:$4 sm:$0xff]  }
  0x81   :  { %4152 = vst [vmem:[#allocation36_spill] sm:$0xff] %v3420_v28 }
  0x86   :  { %516 = vmatmul.mubr.bf16.gmra.mrb[48].mxu0 %v153_v34  ;;  %v3113_v34 = vld [vmem:[%s4059_s3 + $0x4] ss:$8 sps:$4 sm:$0xff]  }
  0x87   :  { %2241 = vmatprep.mubr.msk.bf16.mxu0 %vm283_vm0, %v156_v35  ;;  %v3119_v35 = vld [vmem:[%s4059_s3] ss:$8 sps:$4 sm:$0xff]   ;;  %1255 = vmatprep.subr.bf16.mxu0 %v3113_v34 }
  0x88   :  { %1256 = vmatpush1.bf16.msra.mxu0 %v3119_v35 }
  0x89   :  { %1257 = vmatprep.subr.bf16.mxu0 %v3126_v37 }
  0x8c   :  { %1258 = vmatpush1.bf16.msra.mxu0 %v3131_v38 }
  0x8e   :  { %526 = vmatmul.mubr.bf16.gmra.mrb[52].mxu0 %v155_v40  ;;  %v3142_v40 = vld [vmem:[%s4059_s3 + $0x20] ss:$8 sps:$4 sm:$0xff]  }
  0x8f   :  { %2242 = vmatprep.mubr.msk.bf16.mxu0 %vm283_vm0, %v158_v41  ;;  %v3147_v41 = vld [vmem:[%s4059_s3 + $0x24] ss:$8 sps:$4 sm:$0xff]  }
  0x90   :  { %1259 = vmatprep.subr.bf16.mxu0 %v3147_v41 }
  0x91   :  { %1260 = vmatpush1.bf16.msra.mxu0 %v3142_v40 }
  0x92   :  { %1261 = vmatprep.subr.bf16.mxu0 %v3167_v44 }
  0x96   :  { %536 = vmatmul.mubr.bf16.gmra.mrb[56].mxu0 %v157_v46  ;;  %v3178_v46 = vld [vmem:[%s4059_s3 + $0x30] ss:$8 sps:$4 sm:$0xff]  }
  0x97   :  { %2243 = vmatprep.mubr.msk.bf16.mxu0 %vm283_vm0, %v160_v47  ;;  %v3185_v47 = vld [vmem:[%s4059_s3 + $0x124] ss:$8 sps:$4 sm:$0xff]   ;;  %1262 = vmatpush1.bf16.msra.mxu0 %v3178_v46 }
  0x98   :  { %4122 = vst [vmem:[#allocation6_spill] sm:$0xff] %v3185_v47  ;;  %1332 = vmatprep.subr.bf16.mxu1 %v3185_v47  ;;  %1263 = vmatprep.subr.bf16.mxu0 %v3195_v49 }
  0x99   :  { %1333 = vmatpush1.bf16.msra.mxu1 %v3201_v50 }
  0x9a   :  { %1334 = vmatprep.subr.bf16.mxu1 %v3210_v51 }
  0x9b   :  { %1264 = vmatpush1.bf16.msra.mxu0 %v3190_v48 }
  0x9e   :  { %546 = vmatmul.mubr.bf16.gmra.mrb[60].mxu0 %v159_v52  ;;  %v3215_v52 = vld [vmem:[%s4059_s3 + $0x54] ss:$8 sps:$4 sm:$0xff]  }
  0x9f   :  { %2244 = vmatprep.mubr.msk.bf16.mxu0 %vm283_vm0, %v162_v53  ;;  %v3220_v53 = vld [vmem:[%s4059_s3 + $0x130] ss:$8 sps:$4 sm:$0xff]   ;;  %1265 = vmatprep.subr.bf16.mxu0 %v3215_v52 }
  0xa0   :  { %4125 = vst [vmem:[#allocation9_spill] sm:$0xff] %v3220_v53  ;;  %1335 = vmatpush1.bf16.msra.mxu1 %v3220_v53  ;;  %1266 = vmatpush1.bf16.msra.mxu0 %v3226_v54 }
  0xa1   :  { %1336 = vmatprep.subr.bf16.mxu1 %v3233_v55  ;;  %1267 = vmatprep.subr.bf16.mxu0 %v3243_v57 }
  0xa4   :  { %1268 = vmatpush1.bf16.msra.mxu0 %v3238_v56 }
  0xa5   :  { %1269 = vmatprep.subr.bf16.mxu0 %v3263_v60 }
  0xa6   :  { %556 = vmatmul.mubr.bf16.gmra.mrb[64].mxu0 %v161_v58  ;;  %v3249_v58 = vld [vmem:[%s4059_s3 + $0x140] ss:$8 sps:$4 sm:$0xff]  }
  0xa7   :  { %2245 = vmatprep.mubr.msk.bf16.mxu0 %vm283_vm0, %v164_v59  ;;  %4127 = vst [vmem:[#allocation11_spill] sm:$0xff] %v3249_v58  ;;  %1337 = vmatpush1.bf16.msra.mxu1 %v3249_v58  ;;  %v3258_v59 = vld [vmem:[%s4059_s3 + $0x154] ss:$8 sps:$4 sm:$0xff]  }
  0xa8   :  { %4128 = vst [vmem:[#allocation12_spill] sm:$0xff] %v3258_v59  ;;  %1338 = vmatprep.subr.bf16.mxu1 %v3258_v59  ;;  %1270 = vmatpush1.bf16.msra.mxu0 %v3274_v62  ;;  %v3527_v59 = vld [vmem:[%s4059_s3 + $0x1f0] ss:$8 sps:$4 sm:$0xff]  }
  0xa9   :  { %4167 = vst [vmem:[#allocation51_spill] sm:$0xff] %v3527_v59 }
  0xab   :  { %1339 = vmatpush1.bf16.msra.mxu1 %v3268_v61 }
  0xac   :  { %1340 = vmatprep.subr.bf16.mxu1 %v3281_v63 }
  0xae   :  { %566 = vmatmul.mubr.bf16.gmra.mrb[68].mxu0 %v163_v0  ;;  %v3286_v0 = vld [vmem:[%s4059_s3 + $0x80] ss:$8 sps:$4 sm:$0xff]  }
  0xaf   :  { %2246 = vmatprep.mubr.msk.bf16.mxu0 %vm283_vm0, %v166_v1  ;;  %4133 = vst [vmem:[#allocation17_spill] sm:$0xff] %v3286_v0  ;;  %v3291_v1 = vld [vmem:[%s4059_s3 + $0x84] ss:$8 sps:$4 sm:$0xff]   ;;  %1341 = vmatpush1.bf16.msra.mxu1 %v3297_v2 }
  0xb0   :  { %4134 = vst [vmem:[#allocation18_spill] sm:$0xff] %v3291_v1  ;;  %1271 = vmatprep.subr.bf16.mxu0 %v3291_v1  ;;  %1342 = vmatprep.subr.bf16.mxu1 %v3308_v4  ;;  %v3506_v2 = vld [vmem:[%s4059_s3 + $0x1e4] ss:$8 sps:$4 sm:$0xff]  }
  0xb1   :  { %1272 = vmatpush1.bf16.msra.mxu0 %v3286_v0  ;;  %4164 = vst [vmem:[#allocation48_spill] sm:$0xff] %v3506_v2 }
  0xb6   :  { %576 = vmatmul.mubr.bf16.gmra.mrb[72].mxu0 %v165_v6  ;;  %v3315_v6 = vld [vmem:[%s4059_s3 + $0x94] ss:$8 sps:$4 sm:$0xff]  }
  0xb7   :  { %2247 = vmatprep.mubr.msk.bf16.mxu0 %vm283_vm0, %v168_v7  ;;  %4137 = vst [vmem:[#allocation21_spill] sm:$0xff] %v3315_v6  ;;  %v3320_v7 = vld [vmem:[%s4059_s3 + $0x170] ss:$8 sps:$4 sm:$0xff]   ;;  %1273 = vmatprep.subr.bf16.mxu0 %v3315_v6 }
  0xb8   :  { %4138 = vst [vmem:[#allocation22_spill] sm:$0xff] %v3320_v7  ;;  %1343 = vmatpush1.bf16.msra.mxu1 %v3320_v7  ;;  %1274 = vmatpush1.bf16.msra.mxu0 %v3328_v9  ;;  %v3496_v7 = vld [vmem:[%s4059_s3 + $0xf0] ss:$8 sps:$4 sm:$0xff]  }
  0xb9   :  { %1344 = vmatprep.subr.bf16.mxu1 %v3337_v11  ;;  %4163 = vst [vmem:[#allocation47_spill] sm:$0xff] %v3496_v7 }
  0xbc   :  { %1345 = vmatpush1.bf16.msra.mxu1 %v3353_v14 }
  0xbd   :  { %1346 = vmatprep.subr.bf16.mxu1 %v3364_v16  ;;  %v3476_v16 = vld [vmem:[%s4059_s3 + $0x1d4] ss:$8 sps:$4 sm:$0xff]  }
  0xbe   :  { %586 = vmatmul.mubr.bf16.gmra.mrb[76].mxu0 %v167_v12  ;;  %v3342_v12 = vld [vmem:[%s4059_s3 + $0xa0] ss:$8 sps:$4 sm:$0xff]   ;;  %4160 = vst [vmem:[#allocation44_spill] sm:$0xff] %v3476_v16 }
  0xbf   :  { %2248 = vmatprep.mubr.msk.bf16.mxu0 %vm283_vm0, %v170_v13  ;;  %4141 = vst [vmem:[#allocation25_spill] sm:$0xff] %v3342_v12  ;;  %v3348_v13 = vld [vmem:[%s4059_s3 + $0xa4] ss:$8 sps:$4 sm:$0xff]  }
  0xc0   :  { %4142 = vst [vmem:[#allocation26_spill] sm:$0xff] %v3348_v13  ;;  %1275 = vmatprep.subr.bf16.mxu0 %v3348_v13 }
  0xc1   :  { %1276 = vmatpush1.bf16.msra.mxu0 %v3342_v12 }
  0xc6   :  { %596 = vmatmul.mubr.bf16.gmra.mrb[80].mxu0 %v169_v18  ;;  %v3371_v18 = vld [vmem:[%s4059_s3 + $0xb4] ss:$8 sps:$4 sm:$0xff]  }
  0xc7   :  { %2249 = vmatprep.mubr.msk.bf16.mxu0 %vm283_vm0, %v172_v19  ;;  %4145 = vst [vmem:[#allocation29_spill] sm:$0xff] %v3371_v18  ;;  %v3376_v19 = vld [vmem:[%s4059_s3 + $0x190] ss:$8 sps:$4 sm:$0xff]   ;;  %1277 = vmatprep.subr.bf16.mxu0 %v3371_v18 }
  0xc8   :  { %4146 = vst [vmem:[#allocation30_spill] sm:$0xff] %v3376_v19  ;;  %1347 = vmatpush1.bf16.msra.mxu1 %v3376_v19  ;;  %1278 = vmatpush1.bf16.msra.mxu0 %v3384_v21 }
  0xc9   :  { %1348 = vmatprep.subr.bf16.mxu1 %v3393_v23  ;;  %v3460_v23 = vld [vmem:[%s4059_s3 + $0x1c0] ss:$8 sps:$4 sm:$0xff]  }
  0xca   :  { %4158 = vst [vmem:[#allocation42_spill] sm:$0xff] %v3460_v23 }
  0xcc   :  { %1349 = vmatpush1.bf16.msra.mxu1 %v3409_v26  ;;  %v3450_v26 = vld [vmem:[%s4059_s3 + $0x1c4] ss:$8 sps:$4 sm:$0xff]  }
  0xcd   :  { %1350 = vmatprep.subr.bf16.mxu1 %v3420_v28  ;;  %4156 = vst [vmem:[#allocation40_spill] sm:$0xff] %v3450_v26  ;;  %v3455_v28 = vld [vmem:[%s4059_s3 + $0xe4] ss:$8 sps:$4 sm:$0xff]  }
  0xce   :  { %606 = vmatmul.mubr.bf16.gmra.mrb[84].mxu0 %v171_v24  ;;  %v3399_v24 = vld [vmem:[%s4059_s3 + $0xc0] ss:$8 sps:$4 sm:$0xff]   ;;  %4157 = vst [vmem:[#allocation41_spill] sm:$0xff] %v3455_v28 }
  0xcf   :  { %2250 = vmatprep.mubr.msk.bf16.mxu0 %vm283_vm0, %v174_v25  ;;  %4149 = vst [vmem:[#allocation33_spill] sm:$0xff] %v3399_v24  ;;  %v3404_v25 = vld [vmem:[%s4059_s3 + $0xc4] ss:$8 sps:$4 sm:$0xff]  }
  0xd0   :  { %4150 = vst [vmem:[#allocation34_spill] sm:$0xff] %v3404_v25  ;;  %1279 = vmatprep.subr.bf16.mxu0 %v3404_v25 }
  0xd1   :  { %1280 = vmatpush1.bf16.msra.mxu0 %v3399_v24 }
  0xd6   :  { %616 = vmatmul.mubr.bf16.gmra.mrb[88].mxu0 %v173_v30  ;;  %v3427_v30 = vld [vmem:[%s4059_s3 + $0xd4] ss:$8 sps:$4 sm:$0xff]  }
  0xd7   :  { %2251 = vmatprep.mubr.msk.bf16.mxu0 %vm283_vm0, %v176_v31  ;;  %4153 = vst [vmem:[#allocation37_spill] sm:$0xff] %v3427_v30  ;;  %v3432_v31 = vld [vmem:[%s4059_s3 + $0x1b0] ss:$8 sps:$4 sm:$0xff]   ;;  %1281 = vmatprep.subr.bf16.mxu0 %v3427_v30 }
  0xd8   :  { %4154 = vst [vmem:[#allocation38_spill] sm:$0xff] %v3432_v31  ;;  %1351 = vmatpush1.bf16.msra.mxu1 %v3432_v31  ;;  %1282 = vmatpush1.bf16.msra.mxu0 %v3440_v33  ;;  %v3466_v31 = vld [vmem:[%s4059_s3 + $0xe0] ss:$8 sps:$4 sm:$0xff]  }
  0xd9   :  { %1352 = vmatprep.subr.bf16.mxu1 %v3450_v26  ;;  %4159 = vst [vmem:[#allocation43_spill] sm:$0xff] %v3466_v31  ;;  %1283 = vmatprep.subr.bf16.mxu0 %v3455_v28  ;;  %v3483_v26 = vld [vmem:[%s4059_s3 + $0xf4] ss:$8 sps:$4 sm:$0xff]  }
  0xda   :  { %4161 = vst [vmem:[#allocation45_spill] sm:$0xff] %v3483_v26 }
  0xdc   :  { %1353 = vmatpush1.bf16.msra.mxu1 %v3460_v23  ;;  %1284 = vmatpush1.bf16.msra.mxu0 %v3466_v31  ;;  %v3488_v23 = vld [vmem:[%s4059_s3 + $0x1d0] ss:$8 sps:$4 sm:$0xff]  }
  0xdd   :  { %4162 = vst [vmem:[#allocation46_spill] sm:$0xff] %v3488_v23  ;;  %1354 = vmatprep.subr.bf16.mxu1 %v3476_v16  ;;  %1285 = vmatprep.subr.bf16.mxu0 %v3483_v26  ;;  %v3511_v16 = vld [vmem:[%s4059_s3 + $0x1e0] ss:$8 sps:$4 sm:$0xff]  }
  0xde   :  { %626 = vmatmul.mubr.bf16.gmra.mrb[92].mxu0 %v175_v36  ;;  %4165 = vst [vmem:[#allocation49_spill] sm:$0xff] %v3511_v16 }
  0xe0   :  { %1355 = vmatpush1.bf16.msra.mxu1 %v3488_v23  ;;  %1286 = vmatpush1.bf16.msra.mxu0 %v3496_v7  ;;  %v3520_v23 = vld [vmem:[%s4059_s3 + $0x1f4] ss:$8 sps:$4 sm:$0xff]  }
  0xe1   :  { %1356 = vmatprep.subr.bf16.mxu1 %v3506_v2  ;;  %4166 = vst [vmem:[#allocation50_spill] sm:$0xff] %v3520_v23 }
  0xe4   :  { %1357 = vmatpush1.bf16.msra.mxu1 %v3511_v16  ;;  %v3538_v16 = vld [vmem:[%s4059_s3 + $0x204] ss:$8 sps:$4 sm:$0xff]  }
  0xe5   :  { %1358 = vmatprep.subr.bf16.mxu1 %v3520_v23  ;;  %4168 = vst [vmem:[#allocation52_spill] sm:$0xff] %v3538_v16 }
  0xe8   :  { %1359 = vmatpush1.bf16.msra.mxu1 %v3527_v59 }
  0xe9   :  { %1401 = vmatprep.subr.bf16.mxu1 %v3538_v16 }
  0xf9   :  { %v3302_v3 = vpop.f32.mrb[0].mxu0 }
  0xfa   :  { %v3310_v5 = vpop.f32.mrb[1].mxu0 }
  0xfb   :  { %v3322_v8 = vpop.f32.mrb[2].mxu0 }
  0xfc   :  { %v3330_v10 = vpop.f32.mrb[3].mxu0 }
 0x101   :  { %v3358_v15 = vpop.f32.mrb[4].mxu0 }
 0x102   :  { %v3366_v17 = vpop.f32.mrb[5].mxu0 }
 0x103   :  { %v3378_v20 = vpop.f32.mrb[6].mxu0 }
 0x104   :  { %v3386_v22 = vpop.f32.mrb[7].mxu0 }
 0x109   :  { %v3414_v27 = vpop.f32.mrb[8].mxu0 }
 0x10a   :  { %v3422_v29 = vpop.f32.mrb[9].mxu0 }
 0x10b   :  { %v3434_v32 = vpop.f32.mrb[10].mxu0 }
 0x10c   :  { %v3442_v36 = vpop.f32.mrb[11].mxu0 }
 0x111   :  { %v3470_v19 = vpop.f32.mrb[12].mxu0 }
 0x112   :  { %v3478_v14 = vpop.f32.mrb[13].mxu0 }
 0x113   :  { %v3490_v11 = vpop.f32.mrb[14].mxu0 }
 0x114   :  { %v3498_v4 = vpop.f32.mrb[15].mxu0 }
 0x119   :  { %v3515_v63 = vpop.f32.mrb[16].mxu0 }
 0x11a   :  { %v3522_v61 = vpop.f32.mrb[17].mxu0 }
 0x11b   :  { %v3529_v58 = vpop.f32.mrb[18].mxu0 }
 0x11c   :  { %v3532_v2 = vpop.f32.mrb[19].mxu0 }
 0x121   :  { %v3541_v55 = vpop.f32.mrb[20].mxu0 }
 0x122   :  { %v3543_v53 = vpop.f32.mrb[21].mxu0 }
 0x123   :  { %v3545_v51 = vpop.f32.mrb[22].mxu0 }
 0x124   :  { %v3547_v50 = vpop.f32.mrb[23].mxu0 }
 0x129   :  { %v457_v23 = vpop.f32.mrb[24].mxu0 }
 0x12a   :  { %v636_v47 = vmax.f32 %v3302_v3, %v457_v23  ;;  %v459_v45 = vpop.f32.mrb[25].mxu0 }
 0x12b   :  { %v637_v59 = vmax.f32 %v3310_v5, %v459_v45  ;;  %v461_v43 = vpop.f32.mrb[26].mxu0 }
 0x12c   :  { %v638_v16 = vmax.f32 %v3322_v8, %v461_v43  ;;  %v463_v39 = vpop.f32.mrb[27].mxu0 }
 0x12d   :  { %v660_v7 = vmax.f32 %v636_v47, %v637_v59  ;;  %v639_v26 = vmax.f32 %v3330_v10, %v463_v39 }
 0x12f   :  { %v679_v31 = vadd.f32 %v3554_v42, %v660_v7  ;;  %v661_v28 = vmax.f32 %v638_v16, %v639_v26 }
 0x131   :  { %v680_v3 = vadd.f32 %v3554_v42, %v661_v28  ;;  %v467_v23 = vpop.f32.mrb[28].mxu0  ;;  %v691_v33 = vmax.f32 %v679_v31, 0.0 }
 0x132   :  { %v640_v45 = vmax.f32 %v3358_v15, %v467_v23  ;;  %v469_v5 = vpop.f32.mrb[29].mxu0 }
 0x133   :  { %v692_v30 = vmax.f32 %v680_v3, 0.0  ;;  %v641_v24 = vmax.f32 %v3366_v17, %v469_v5  ;;  %v471_v25 = vpop.f32.mrb[30].mxu0 }
 0x134   :  { %v642_v43 = vmax.f32 %v3378_v20, %v471_v25  ;;  %v473_v8 = vpop.f32.mrb[31].mxu0 }
 0x135   :  { %v3563_v47 = vpack.c.bf16 %v692_v30, %v691_v33  ;;  %v662_v39 = vmax.f32 %v640_v45, %v641_v24  ;;  %v643_v59 = vmax.f32 %v3386_v22, %v473_v8 }
 0x137   :  { %v681_v7 = vadd.f32 %v3554_v42, %v662_v39  ;;  %v663_v10 = vmax.f32 %v642_v43, %v643_v59 }
 0x139   :  { %v682_v16 = vadd.f32 %v3554_v42, %v663_v10  ;;  %v477_v15 = vpop.f32.mrb[32].mxu0  ;;  %v693_v31 = vmax.f32 %v681_v7, 0.0 }
 0x13a   :  { %v644_v26 = vmax.f32 %v3414_v27, %v477_v15  ;;  %v479_v28 = vpop.f32.mrb[33].mxu0 }
 0x13b   :  { %v694_v17 = vmax.f32 %v682_v16, 0.0  ;;  %v645_v3 = vmax.f32 %v3422_v29, %v479_v28  ;;  %v481_v20 = vpop.f32.mrb[34].mxu0 }
 0x13c   :  { %v646_v25 = vmax.f32 %v3434_v32, %v481_v20  ;;  %v483_v30 = vpop.f32.mrb[35].mxu0 }
 0x13d   :  { %v664_v24 = vmax.f32 %v644_v26, %v645_v3  ;;  %v647_v22 = vmax.f32 %v3442_v36, %v483_v30  ;;  %v3572_v33 = vpack.c.bf16 %v694_v17, %v693_v31 }
 0x13f   :  { %v683_v23 = vadd.f32 %v3554_v42, %v664_v24  ;;  %v665_v45 = vmax.f32 %v646_v25, %v647_v22 }
 0x141   :  { %v684_v5 = vadd.f32 %v3554_v42, %v665_v45  ;;  %v487_v27 = vpop.f32.mrb[36].mxu0  ;;  %v695_v39 = vmax.f32 %v683_v23, 0.0 }
 0x142   :  { %v648_v43 = vmax.f32 %v3470_v19, %v487_v27  ;;  %v489_v8 = vpop.f32.mrb[37].mxu0 }
 0x143   :  { %v696_v29 = vmax.f32 %v684_v5, 0.0  ;;  %v649_v59 = vmax.f32 %v3478_v14, %v489_v8  ;;  %v491_v32 = vpop.f32.mrb[38].mxu0 }
 0x144   :  { %v650_v7 = vmax.f32 %v3490_v11, %v491_v32  ;;  %v493_v10 = vpop.f32.mrb[39].mxu0 }
 0x145   :  { %v3579_v36 = vpack.c.bf16 %v696_v29, %v695_v39  ;;  %v666_v16 = vmax.f32 %v648_v43, %v649_v59  ;;  %v651_v15 = vmax.f32 %v3498_v4, %v493_v10 }
 0x147   :  { %v685_v26 = vadd.f32 %v3554_v42, %v666_v16  ;;  %v667_v28 = vmax.f32 %v650_v7, %v651_v15 }
 0x149   :  { %v686_v31 = vadd.f32 %v3554_v42, %v667_v28  ;;  %v497_v19 = vpop.f32.mrb[40].mxu0  ;;  %v697_v20 = vmax.f32 %v685_v26, 0.0 }
 0x14a   :  { %v652_v17 = vmax.f32 %v3515_v63, %v497_v19  ;;  %v499_v3 = vpop.f32.mrb[41].mxu0 }
 0x14b   :  { %v698_v14 = vmax.f32 %v686_v31, 0.0  ;;  %v653_v25 = vmax.f32 %v3522_v61, %v499_v3  ;;  %v501_v11 = vpop.f32.mrb[42].mxu0 }
 0x14c   :  { %v654_v30 = vmax.f32 %v3529_v58, %v501_v11  ;;  %v503_v24 = vpop.f32.mrb[43].mxu0 }
 0x14d   :  { %v3587_v22 = vpack.c.bf16 %v698_v14, %v697_v20  ;;  %v668_v4 = vmax.f32 %v652_v17, %v653_v25  ;;  %v655_v23 = vmax.f32 %v3532_v2, %v503_v24 }
 0x14f   :  { %v687_v45 = vadd.f32 %v3554_v42, %v668_v4  ;;  %v669_v5 = vmax.f32 %v654_v30, %v655_v23 }
 0x151   :  { %v688_v27 = vadd.f32 %v3554_v42, %v669_v5  ;;  %v507_v63 = vpop.f32.mrb[44].mxu0  ;;  %v699_v39 = vmax.f32 %v687_v45, 0.0 }
 0x152   :  { %v656_v43 = vmax.f32 %v3541_v55, %v507_v63  ;;  %v509_v8 = vpop.f32.mrb[45].mxu0 }
 0x153   :  { %v700_v61 = vmax.f32 %v688_v27, 0.0  ;;  %v657_v29 = vmax.f32 %v3543_v53, %v509_v8  ;;  %v511_v58 = vpop.f32.mrb[46].mxu0 }
 0x154   :  { %v658_v59 = vmax.f32 %v3545_v51, %v511_v58  ;;  %v513_v32 = vpop.f32.mrb[47].mxu0 }
 0x155   :  { %v3595_v7 = vpack.c.bf16 %v700_v61, %v699_v39  ;;  %v670_v2 = vmax.f32 %v656_v43, %v657_v29  ;;  %v659_v10 = vmax.f32 %v3547_v50, %v513_v32 }
 0x157   :  { %v689_v16 = vadd.f32 %v3554_v42, %v670_v2  ;;  %v671_v15 = vmax.f32 %v658_v59, %v659_v10 }
 0x159   :  { %v690_v26 = vadd.f32 %v3554_v42, %v671_v15  ;;  %v517_v55 = vpop.f32.mrb[48].mxu0  ;;  %v701_v31 = vmax.f32 %v689_v16, 0.0 }
 0x15a   :  { %v519_v28 = vpop.f32.mrb[49].mxu0 }
 0x15b   :  { %v702_v19 = vmax.f32 %v690_v26, 0.0  ;;  %v521_v17 = vpop.f32.mrb[50].mxu0 }
 0x15c   :  { %v523_v53 = vpop.f32.mrb[51].mxu0 }
 0x15d   :  { %v3600_v3 = vpack.c.bf16 %v702_v19, %v701_v31 }
 0x161   :  { %v527_v51 = vpop.f32.mrb[52].mxu0 }
 0x162   :  { %v529_v20 = vpop.f32.mrb[53].mxu0 }
 0x163   :  { %v531_v14 = vpop.f32.mrb[54].mxu0 }
 0x164   :  { %v533_v25 = vpop.f32.mrb[55].mxu0 }
 0x169   :  { %v537_v11 = vpop.f32.mrb[56].mxu0 }
 0x16a   :  { %v539_v30 = vpop.f32.mrb[57].mxu0 }
 0x16b   :  { %v541_v50 = vpop.f32.mrb[58].mxu0 }
 0x16c   :  { %v543_v24 = vpop.f32.mrb[59].mxu0 }
 0x171   :  { %v3602_v4 = vpop.f32.mrb[60].mxu0 }
 0x172   :  { %v3604_v23 = vpop.f32.mrb[61].mxu0 }
 0x173   :  { %v3606_v45 = vpop.f32.mrb[62].mxu0 }
 0x174   :  { %v3608_v5 = vpop.f32.mrb[63].mxu0 }
 0x179   :  { %v3610_v27 = vpop.f32.mrb[64].mxu0 }
 0x17a   :  { %v3612_v63 = vpop.f32.mrb[65].mxu0 }
 0x17b   :  { %v3614_v43 = vpop.f32.mrb[66].mxu0 }
 0x17c   :  { %v3616_v8 = vpop.f32.mrb[67].mxu0 }
 0x181   :  { %v3618_v39 = vpop.f32.mrb[68].mxu0 }
 0x182   :  { %v3620_v61 = vpop.f32.mrb[69].mxu0 }
 0x183   :  { %v3622_v29 = vpop.f32.mrb[70].mxu0 }
 0x184   :  { %v3624_v58 = vpop.f32.mrb[71].mxu0 }
 0x189   :  { %v577_v59 = vpop.f32.mrb[72].mxu0 }
 0x18a   :  { %v709_v32 = vmax.f32 %v517_v55, %v577_v59  ;;  %v579_v2 = vpop.f32.mrb[73].mxu0 }
 0x18b   :  { %v710_v10 = vmax.f32 %v519_v28, %v579_v2  ;;  %v581_v16 = vpop.f32.mrb[74].mxu0 }
 0x18c   :  { %v711_v15 = vmax.f32 %v521_v17, %v581_v16  ;;  %v583_v26 = vpop.f32.mrb[75].mxu0 }
 0x18d   :  { %v733_v31 = vmax.f32 %v709_v32, %v710_v10  ;;  %v712_v19 = vmax.f32 %v523_v53, %v583_v26  ;;  %v3656_v10 = vld [vmem:[%s4059_s3 + $0x210] ss:$8 sps:$4 sm:$0xff]   ;;  %v3663_v26 = vld [vmem:[%s4059_s3 + $0x224] ss:$8 sps:$4 sm:$0xff]  }
 0x18f   :  { %v745_v21 = vadd.f32 %v3554_v42, %v733_v31  ;;  %v734_v18 = vmax.f32 %v711_v15, %v712_v19 }
 0x191   :  { %v746_v12 = vadd.f32 %v3554_v42, %v734_v18  ;;  %v587_v13 = vpop.f32.mrb[76].mxu0  ;;  %v757_v0 = vmax.f32 %v745_v21, 0.0 }
 0x192   :  { %v713_v9 = vmax.f32 %v527_v51, %v587_v13  ;;  %v589_v6 = vpop.f32.mrb[77].mxu0 }
 0x193   :  { %v758_v1 = vmax.f32 %v746_v12, 0.0  ;;  %v714_v62 = vmax.f32 %v529_v20, %v589_v6  ;;  %v591_v60 = vpop.f32.mrb[78].mxu0 }
 0x194   :  { %v715_v55 = vmax.f32 %v531_v14, %v591_v60  ;;  %v593_v59 = vpop.f32.mrb[79].mxu0 }
 0x195   :  { %v735_v28 = vmax.f32 %v713_v9, %v714_v62  ;;  %v716_v2 = vmax.f32 %v533_v25, %v593_v59  ;;  %v3628_v17 = vpack.c.bf16 %v758_v1, %v757_v0  ;;  %v3639_v25 = vld [vmem:[%s4059_s3 + $0x200] ss:$8 sps:$4 sm:$0xff]  }
 0x197   :  { %v747_v53 = vadd.f32 %v3554_v42, %v735_v28  ;;  %v736_v32 = vmax.f32 %v715_v55, %v716_v2  ;;  %1287 = vmatprep.mubr.bf16.mxu0 %v3628_v17 }
 0x198   :  { %1288 = vmatmul.mubr.bf16.vlgmr.msra.gmra.mrb[96].mxu0 %v3563_v47  ;;  %v3644_v47 = vld [vmem:[%s4059_s3 + $0x214] ss:$8 sps:$4 sm:$0xff]  }
 0x199   :  { %v748_v13 = vadd.f32 %v3554_v42, %v736_v32  ;;  %v597_v18 = vpop.f32.mrb[80].mxu0  ;;  %v759_v6 = vmax.f32 %v747_v53, 0.0 }
 0x19a   :  { %v717_v21 = vmax.f32 %v537_v11, %v597_v18  ;;  %v599_v12 = vpop.f32.mrb[81].mxu0 }
 0x19b   :  { %v760_v51 = vmax.f32 %v748_v13, 0.0  ;;  %v718_v60 = vmax.f32 %v539_v30, %v599_v12  ;;  %v601_v20 = vpop.f32.mrb[82].mxu0  ;;  %v3674_v13 = vld [vmem:[%s4059_s3 + $0x220] ss:$8 sps:$4 sm:$0xff]   ;;  %v3692_v12 = vld [vmem:[%s4059_s3 + $0x230] ss:$8 sps:$4 sm:$0xff]  }
 0x19c   :  { %v719_v62 = vmax.f32 %v541_v50, %v601_v20  ;;  %v603_v9 = vpop.f32.mrb[83].mxu0 }
 0x19d   :  { %v3634_v0 = vpack.c.bf16 %v760_v51, %v759_v6  ;;  %v737_v1 = vmax.f32 %v717_v21, %v718_v60  ;;  %v720_v14 = vmax.f32 %v543_v24, %v603_v9  ;;  %v3699_v60 = vld [vmem:[%s4059_s3 + $0x244] ss:$8 sps:$4 sm:$0xff]  }
 0x19f   :  { %v749_v11 = vadd.f32 %v3554_v42, %v737_v1  ;;  %v738_v30 = vmax.f32 %v719_v62, %v720_v14  ;;  %1297 = vmatprep.mubr.bf16.mxu0 %v3634_v0  ;;  %1360 = vmatprep.mubr.bf16.mxu1 %v3634_v0 }
 0x1a0   :  { %1298 = vmatmul.mubr.bf16.gmra.mrb[100].mxu0 %v3572_v33  ;;  %1361 = vmatmul.mubr.bf16.vlgmr.msra.gmra.mrb[0].mxu1 %v3572_v33 }
 0x1a1   :  { %v750_v50 = vadd.f32 %v3554_v42, %v738_v30  ;;  %1402 = vmatpush1.bf16.msra.mxu1 %v3639_v25  ;;  %v607_v24 = vpop.f32.mrb[84].mxu0  ;;  %v761_v31 = vmax.f32 %v749_v11, 0.0 }
 0x1a2   :  { %v721_v16 = vmax.f32 %v3602_v4, %v607_v24  ;;  %v609_v15 = vpop.f32.mrb[85].mxu0  ;;  %1403 = vmatprep.subr.bf16.mxu1 %v3644_v47  ;;  %v3710_v24 = vld [vmem:[%s4059_s3 + $0x240] ss:$8 sps:$4 sm:$0xff]  }
 0x1a3   :  { %v762_v19 = vmax.f32 %v750_v50, 0.0  ;;  %v722_v55 = vmax.f32 %v3604_v23, %v609_v15  ;;  %v611_v59 = vpop.f32.mrb[86].mxu0  ;;  %v3680_v23 = vld [vmem:[%s4059_s3 + $0x234] ss:$8 sps:$4 sm:$0xff]  }
 0x1a4   :  { %v723_v28 = vmax.f32 %v3606_v45, %v611_v59  ;;  %v613_v2 = vpop.f32.mrb[87].mxu0  ;;  %v3735_v59 = vld [vmem:[%s4059_s3 + $0x264] ss:$8 sps:$4 sm:$0xff]  }
 0x1a5   :  { %v3667_v53 = vpack.c.bf16 %v762_v19, %v761_v31  ;;  %v739_v32 = vmax.f32 %v721_v16, %v722_v55  ;;  %v724_v4 = vmax.f32 %v3608_v5, %v613_v2  ;;  %1404 = vmatpush1.bf16.msra.mxu1 %v3656_v10  ;;  %v3728_v31 = vld [vmem:[%s4059_s3 + $0x250] ss:$8 sps:$4 sm:$0xff]  }
 0x1a6   :  { %1405 = vmatprep.subr.bf16.mxu1 %v3663_v26 }
 0x1a7   :  { %v751_v45 = vadd.f32 %v3554_v42, %v739_v32  ;;  %v740_v18 = vmax.f32 %v723_v28, %v724_v4  ;;  %1307 = vmatprep.mubr.bf16.mxu0 %v3667_v53  ;;  %1370 = vmatprep.mubr.bf16.mxu1 %v3667_v53 }
 0x1a8   :  { %1308 = vmatmul.mubr.bf16.gmra.mrb[104].mxu0 %v3579_v36  ;;  %1371 = vmatmul.mubr.bf16.gmra.mrb[4].mxu1 %v3579_v36 }
 0x1a9   :  { %v752_v5 = vadd.f32 %v3554_v42, %v740_v18  ;;  %1406 = vmatpush1.bf16.msra.mxu1 %v3674_v13  ;;  %v617_v21 = vpop.f32.mrb[88].mxu0  ;;  %v763_v20 = vmax.f32 %v751_v45, 0.0 }
 0x1aa   :  { %v725_v6 = vmax.f32 %v3610_v27, %v617_v21  ;;  %v619_v51 = vpop.f32.mrb[89].mxu0  ;;  %1407 = vmatprep.subr.bf16.mxu1 %v3680_v23 }
 0x1ab   :  { %v764_v62 = vmax.f32 %v752_v5, 0.0  ;;  %v726_v9 = vmax.f32 %v3612_v63, %v619_v51  ;;  %v621_v1 = vpop.f32.mrb[90].mxu0  ;;  %v3716_v63 = vld [vmem:[%s4059_s3 + $0x254] ss:$8 sps:$4 sm:$0xff]  }
 0x1ac   :  { %v727_v14 = vmax.f32 %v3614_v43, %v621_v1  ;;  %v623_v11 = vpop.f32.mrb[91].mxu0 }
 0x1ad   :  { %v3703_v30 = vpack.c.bf16 %v764_v62, %v763_v20  ;;  %v741_v50 = vmax.f32 %v725_v6, %v726_v9  ;;  %v728_v27 = vmax.f32 %v3616_v8, %v623_v11  ;;  %1408 = vmatpush1.bf16.msra.mxu1 %v3692_v12  ;;  %v3746_v6 = vld [vmem:[%s4059_s3 + $0x260] ss:$8 sps:$4 sm:$0xff]   ;;  %v3762_v20 = vld [vmem:[%s4059_s3 + $0x270] ss:$8 sps:$4 sm:$0xff]   ;;  %v2692_v62 = vmov 0  }
 0x1ae   :  { %1409 = vmatprep.subr.bf16.mxu1 %v3699_v60  ;;  %v4185_v11 = vld [vmem:[#allocation45_spill] sm:$0xff] }
 0x1af   :  { %v753_v43 = vadd.f32 %v3554_v42, %v741_v50  ;;  %v742_v16 = vmax.f32 %v727_v14, %v728_v27  ;;  %1317 = vmatprep.mubr.bf16.mxu0 %v3703_v30  ;;  %1380 = vmatprep.mubr.bf16.mxu1 %v3703_v30  ;;  %v4186_v50 = vld [vmem:[#allocation47_spill] sm:$0xff]  ;;  %v4187_v27 = vld [vmem:[#allocation2_spill] sm:$0xff] }
 0x1b0   :  { %1318 = vmatmul.mubr.bf16.gmra.mrb[108].mxu0 %v3587_v22  ;;  %1381 = vmatmul.mubr.bf16.gmra.mrb[8].mxu1 %v3587_v22 }
 0x1b1   :  { %v754_v8 = vadd.f32 %v3554_v42, %v742_v16  ;;  %1410 = vmatpush1.bf16.msra.mxu1 %v3710_v24  ;;  %v627_v15 = vpop.f32.mrb[92].mxu0  ;;  %v765_v28 = vmax.f32 %v753_v43, 0.0  ;;  %v4188_v43 = vld [vmem:[#allocation3_spill] sm:$0xff]  ;;  %v4189_v16 = vld [vmem:[#allocation4_spill] sm:$0xff] }
 0x1b2   :  { %v729_v19 = vmax.f32 %v3618_v39, %v627_v15  ;;  %v629_v55 = vpop.f32.mrb[93].mxu0  ;;  %1411 = vmatprep.subr.bf16.mxu1 %v3716_v63  ;;  %v4191_v15 = vld [vmem:[#allocation6_spill] sm:$0xff] }
 0x1b3   :  { %v766_v2 = vmax.f32 %v754_v8, 0.0  ;;  %v730_v32 = vmax.f32 %v3620_v61, %v629_v55  ;;  %v631_v4 = vpop.f32.mrb[94].mxu0  ;;  %v3752_v61 = vld [vmem:[%s4059_s3 + $0x274] ss:$8 sps:$4 sm:$0xff]  }
 0x1b4   :  { %v731_v45 = vmax.f32 %v3622_v29, %v631_v4  ;;  %v633_v18 = vpop.f32.mrb[95].mxu0  ;;  %v4190_v8 = vld [vmem:[#allocation5_spill] sm:$0xff]  ;;  %v4193_v55 = vld [vmem:[#allocation8_spill] sm:$0xff]  ;;  %v4198_v4 = vld [vmem:[#allocation14_spill] sm:$0xff] }
 0x1b5   :  { %v743_v5 = vmax.f32 %v729_v19, %v730_v32  ;;  %v732_v21 = vmax.f32 %v3624_v58, %v633_v18  ;;  %1412 = vmatpush1.bf16.msra.mxu1 %v3728_v31  ;;  %v3741_v39 = vpack.c.bf16 %v766_v2, %v765_v28  ;;  %v4192_v19 = vld [vmem:[#allocation7_spill] sm:$0xff]  ;;  %v4194_v28 = vld [vmem:[#allocation9_spill] sm:$0xff]  ;;  %v4197_v32 = vld [vmem:[#allocation12_spill] sm:$0xff] }
 0x1b6   :  { %1413 = vmatprep.subr.bf16.mxu1 %v3735_v59  ;;  %v4196_v2 = vld [vmem:[#allocation11_spill] sm:$0xff] }
 0x1b7   :  { %v755_v29 = vadd.f32 %v3554_v42, %v743_v5  ;;  %v744_v51 = vmax.f32 %v731_v45, %v732_v21  ;;  %1390 = vmatprep.mubr.bf16.mxu1 %v3741_v39  ;;  %v4199_v45 = vld [vmem:[#allocation16_spill] sm:$0xff]  ;;  %v4200_v18 = vld [vmem:[#allocation19_spill] sm:$0xff]  ;;  %v4202_v21 = vld [vmem:[#allocation22_spill] sm:$0xff] }
 0x1b8   :  { %1391 = vmatmul.mubr.bf16.gmra.mrb[12].mxu1 %v3595_v7  ;;  %v4201_v5 = vld [vmem:[#allocation20_spill] sm:$0xff] }
 0x1b9   :  { %v756_v58 = vadd.f32 %v3554_v42, %v744_v51  ;;  %1414 = vmatpush1.bf16.msra.mxu1 %v3746_v6  ;;  %1433 = vmatprep.mubr.bf16.mxu1 %v2692_v62  ;;  %v767_v9 = vmax.f32 %v755_v29, 0.0  ;;  %v4175_v42 = vld [vmem:[#allocation26_spill] sm:$0xff]  ;;  %v4203_v29 = vld [vmem:[#allocation24_spill] sm:$0xff]  ;;  %v4204_v51 = vld [vmem:[#allocation27_spill] sm:$0xff] }
 0x1ba   :  { %1415 = vmatprep.subr.bf16.mxu1 %v3752_v61 }
 0x1bb   :  { %v768_v1 = vmax.f32 %v756_v58, 0.0  ;;  %v4205_v58 = vld [vmem:[#allocation28_spill] sm:$0xff] }
 0x1bd   :  { %1416 = vmatpush1.bf16.msra.mxu1 %v3762_v20  ;;  %v3767_v14 = vpack.c.bf16 %v768_v1, %v767_v9  ;;  %v4206_v9 = vld [vmem:[#allocation30_spill] sm:$0xff]  ;;  %v4207_v1 = vld [vmem:[#allocation32_spill] sm:$0xff] }
 0x1be   :  { %1474 = vmatprep.subr.bf16.mxu1 %v3113_v34  ;;  %v4169_v34 = vld [vmem:[#allocation13_spill] sm:$0xff] }
 0x1c0   :  { %1434 = vmatmul.mubr.bf16.vlgmr.msra.gmra.mrb[0].mxu1 %v3579_v36 }
 0x1c1   :  { %1475 = vmatpush1.bf16.msra.mxu1 %v3119_v35  ;;  %1443 = vmatprep.mubr.bf16.mxu1 %v2692_v62  ;;  %v4170_v35 = vld [vmem:[#allocation15_spill] sm:$0xff] }
 0x1c2   :  { %1476 = vmatprep.subr.bf16.mxu1 %v3126_v37  ;;  %v4171_v37 = vld [vmem:[#allocation18_spill] sm:$0xff] }
 0x1c5   :  { %1477 = vmatpush1.bf16.msra.mxu1 %v3131_v38  ;;  %v4172_v38 = vld [vmem:[#allocation17_spill] sm:$0xff] }
 0x1c6   :  { %1478 = vmatprep.subr.bf16.mxu1 %v3147_v41  ;;  %v4174_v41 = vld [vmem:[#allocation23_spill] sm:$0xff] }
 0x1c8   :  { %1444 = vmatmul.mubr.bf16.gmra.mrb[4].mxu1 %v3587_v22 }
 0x1c9   :  { %1479 = vmatpush1.bf16.msra.mxu1 %v3142_v40  ;;  %1453 = vmatprep.mubr.bf16.mxu1 %v2692_v62  ;;  %v4173_v40 = vld [vmem:[#allocation21_spill] sm:$0xff] }
 0x1ca   :  { %1480 = vmatprep.subr.bf16.mxu1 %v3167_v44  ;;  %v4176_v44 = vld [vmem:[#allocation25_spill] sm:$0xff] }
 0x1cd   :  { %1481 = vmatpush1.bf16.msra.mxu1 %v3178_v46  ;;  %v4177_v46 = vld [vmem:[#allocation29_spill] sm:$0xff] }
 0x1ce   :  { %1482 = vmatprep.subr.bf16.mxu1 %v3195_v49  ;;  %v4179_v49 = vld [vmem:[#allocation34_spill] sm:$0xff] }
 0x1d0   :  { %1454 = vmatmul.mubr.bf16.gmra.mrb[8].mxu1 %v3595_v7 }
 0x1d1   :  { %1483 = vmatpush1.bf16.msra.mxu1 %v3190_v48  ;;  %1463 = vmatprep.mubr.bf16.mxu1 %v2692_v62  ;;  %v4178_v48 = vld [vmem:[#allocation31_spill] sm:$0xff] }
 0x1d2   :  { %1484 = vmatprep.subr.bf16.mxu1 %v3215_v52  ;;  %v4180_v52 = vld [vmem:[#allocation33_spill] sm:$0xff] }
 0x1d5   :  { %1485 = vmatpush1.bf16.msra.mxu1 %v3226_v54  ;;  %v4181_v54 = vld [vmem:[#allocation37_spill] sm:$0xff] }
 0x1d6   :  { %1486 = vmatprep.subr.bf16.mxu1 %v3243_v57  ;;  %v4183_v57 = vld [vmem:[#allocation41_spill] sm:$0xff] }
 0x1d8   :  { %1464 = vmatmul.mubr.bf16.gmra.mrb[12].mxu1 %v3600_v3 }
 0x1d9   :  { %1487 = vmatpush1.bf16.msra.mxu1 %v3238_v56  ;;  %1506 = vmatprep.mubr.bf16.mxu1 %v3572_v33  ;;  %v4182_v56 = vld [vmem:[#allocation39_spill] sm:$0xff] }
 0x1da   :  { %1488 = vmatprep.subr.bf16.mxu1 %v4169_v34  ;;  %v4184_v33 = vld [vmem:[#allocation43_spill] sm:$0xff] }
 0x1db   :  { %v4208_v34 = vld [vmem:[#allocation35_spill] sm:$0xff] }
 0x1dd   :  { %1489 = vmatpush1.bf16.msra.mxu1 %v4170_v35  ;;  %v4209_v35 = vld [vmem:[#allocation36_spill] sm:$0xff] }
 0x1de   :  { %1490 = vmatprep.subr.bf16.mxu1 %v4171_v37  ;;  %v4210_v37 = vld [vmem:[#allocation38_spill] sm:$0xff] }
 0x1e1   :  { %1491 = vmatpush1.bf16.msra.mxu1 %v4172_v38  ;;  %v4212_v38 = vld [vmem:[#allocation42_spill] sm:$0xff] }
 0x1e2   :  { %1492 = vmatprep.subr.bf16.mxu1 %v4173_v40  ;;  %v4213_v40 = vld [vmem:[#allocation44_spill] sm:$0xff] }
 0x1e5   :  { %1493 = vmatpush1.bf16.msra.mxu1 %v4174_v41  ;;  %v4214_v41 = vld [vmem:[#allocation46_spill] sm:$0xff] }
 0x1e6   :  { %1494 = vmatprep.subr.bf16.mxu1 %v4175_v42  ;;  %v4215_v42 = vld [vmem:[#allocation48_spill] sm:$0xff] }
 0x1e9   :  { %1495 = vmatpush1.bf16.msra.mxu1 %v4176_v44  ;;  %v4216_v44 = vld [vmem:[#allocation49_spill] sm:$0xff] }
 0x1ea   :  { %1496 = vmatprep.subr.bf16.mxu1 %v4177_v46  ;;  %v4217_v46 = vld [vmem:[#allocation50_spill] sm:$0xff] }
 0x1ed   :  { %1497 = vmatpush1.bf16.msra.mxu1 %v4178_v48  ;;  %v4218_v48 = vld [vmem:[#allocation51_spill] sm:$0xff] }
 0x1ee   :  { %1498 = vmatprep.subr.bf16.mxu1 %v4179_v49  ;;  %v4219_v49 = vld [vmem:[#allocation52_spill] sm:$0xff] }
 0x1f1   :  { %1499 = vmatpush1.bf16.msra.mxu1 %v4180_v52 }
 0x1f2   :  { %1500 = vmatprep.subr.bf16.mxu1 %v4181_v54 }
 0x1f5   :  { %1501 = vmatpush1.bf16.msra.mxu1 %v4182_v56 }
 0x1f6   :  { %1502 = vmatprep.subr.bf16.mxu1 %v4183_v57 }
 0x1f9   :  { %1503 = vmatpush1.bf16.msra.mxu1 %v4184_v33 }
 0x1fa   :  { %1504 = vmatprep.subr.bf16.mxu1 %v4185_v11 }
 0x1fd   :  { %1505 = vmatpush1.bf16.msra.mxu1 %v4186_v50 }
 0x1fe   :  { %1547 = vmatprep.subr.bf16.mxu1 %v4187_v27 }
 0x200   :  { %1507 = vmatmul.mubr.bf16.vlgmr.msra.gmra.mrb[16].mxu1 %v3628_v17  ;;  %v4195_v17 = vld [vmem:[#allocation10_spill] sm:$0xff] }
 0x201   :  { %1516 = vmatprep.mubr.bf16.mxu1 %v3579_v36  ;;  %1548 = vmatpush1.bf16.msra.mxu1 %v4188_v43 }
 0x202   :  { %1549 = vmatprep.subr.bf16.mxu1 %v4189_v16 }
 0x205   :  { %1550 = vmatpush1.bf16.msra.mxu1 %v4190_v8 }
 0x206   :  { %1551 = vmatprep.subr.bf16.mxu1 %v4191_v15 }
 0x208   :  { %1517 = vmatmul.mubr.bf16.gmra.mrb[20].mxu1 %v3634_v0 }
 0x209   :  { %1526 = vmatprep.mubr.bf16.mxu1 %v3587_v22  ;;  %1552 = vmatpush1.bf16.msra.mxu1 %v4192_v19 }
 0x20a   :  { %1553 = vmatprep.subr.bf16.mxu1 %v4193_v55 }
 0x20d   :  { %1554 = vmatpush1.bf16.msra.mxu1 %v4194_v28 }
 0x20e   :  { %1555 = vmatprep.subr.bf16.mxu1 %v4195_v17 }
 0x210   :  { %1527 = vmatmul.mubr.bf16.gmra.mrb[24].mxu1 %v3667_v53 }
 0x211   :  { %1536 = vmatprep.mubr.bf16.mxu1 %v3595_v7  ;;  %1556 = vmatpush1.bf16.msra.mxu1 %v4196_v2 }
 0x212   :  { %1557 = vmatprep.subr.bf16.mxu1 %v4197_v32 }
 0x215   :  { %1558 = vmatpush1.bf16.msra.mxu1 %v4198_v4 }
 0x216   :  { %1559 = vmatprep.subr.bf16.mxu1 %v4199_v45 }
 0x218   :  { %1537 = vmatmul.mubr.bf16.gmra.mrb[28].mxu1 %v3703_v30 }
 0x219   :  { %1560 = vmatpush1.bf16.msra.mxu1 %v4200_v18  ;;  %1579 = vmatprep.mubr.bf16.mxu1 %v3579_v36  ;;  %v4211_v36 = vld [vmem:[#allocation40_spill] sm:$0xff] }
 0x21a   :  { %1561 = vmatprep.subr.bf16.mxu1 %v4201_v5 }
 0x21d   :  { %1562 = vmatpush1.bf16.msra.mxu1 %v4202_v21 }
 0x21e   :  { %1563 = vmatprep.subr.bf16.mxu1 %v4203_v29 }
 0x221   :  { %1564 = vmatpush1.bf16.msra.mxu1 %v4204_v51 }
 0x222   :  { %1565 = vmatprep.subr.bf16.mxu1 %v4205_v58 }
 0x225   :  { %1566 = vmatpush1.bf16.msra.mxu1 %v4206_v9 }
 0x226   :  { %1567 = vmatprep.subr.bf16.mxu1 %v4207_v1 }
 0x229   :  { %1568 = vmatpush1.bf16.msra.mxu1 %v4208_v34 }
 0x22a   :  { %1569 = vmatprep.subr.bf16.mxu1 %v4209_v35  ;;  %v2653_v35 = vld [vmem:[%s4061_s5 + $0x10] sm:$0xff]  }
 0x22d   :  { %1570 = vmatpush1.bf16.msra.mxu1 %v4210_v37  ;;  %v2654_v37 = vld [vmem:[%s4061_s5 + $0x58] sm:$0xff]  }
 0x22e   :  { %1571 = vmatprep.subr.bf16.mxu1 %v4211_v36  ;;  %v2655_v36 = vld [vmem:[%s4061_s5 + $0x18] sm:$0xff]  }
 0x231   :  { %1572 = vmatpush1.bf16.msra.mxu1 %v4212_v38  ;;  %v2656_v38 = vld [vmem:[%s4061_s5 + $0x60] sm:$0xff]  }
 0x232   :  { %1573 = vmatprep.subr.bf16.mxu1 %v4213_v40  ;;  %v2657_v40 = vld [vmem:[%s4061_s5 + $0xc0] sm:$0xff]  }
 0x233   :  { %2395 = vmatprep.subr.bf16.mxu0 %v2657_v40 }
 0x235   :  { %1574 = vmatpush1.bf16.msra.mxu1 %v4214_v41  ;;  %v2658_v41 = vld [vmem:[%s4061_s5 + $0x20] sm:$0xff]  }
 0x236   :  { %1575 = vmatprep.subr.bf16.mxu1 %v4215_v42  ;;  %v2659_v42 = vld [vmem:[%s4061_s5 + $0x80] sm:$0xff]  }
 0x237   :  { %2396 = vmatpush3.bf16.msra.mxu0 %v2659_v42 }
 0x239   :  { %1576 = vmatpush1.bf16.msra.mxu1 %v4216_v44  ;;  %v2660_v44 = vld [vmem:[%s4061_s5 + $0x68] sm:$0xff]  }
 0x23a   :  { %1577 = vmatprep.subr.bf16.mxu1 %v4217_v46  ;;  %v2661_v46 = vld [vmem:[%s4061_s5 + $0xc8] sm:$0xff]  }
 0x23b   :  { %2397 = vmatprep.subr.bf16.mxu0 %v2661_v46 }
 0x23d   :  { %1578 = vmatpush1.bf16.msra.mxu1 %v4218_v48  ;;  %v2662_v48 = vld [vmem:[%s4061_s5 + $0x28] sm:$0xff]  }
 0x23e   :  { %1620 = vmatprep.subr.bf16.mxu1 %v4219_v49  ;;  %v2663_v49 = vld [vmem:[%s4061_s5 + $0x88] sm:$0xff]  }
 0x23f   :  { %2398 = vmatpush3.bf16.msra.mxu0 %v2663_v49 }
 0x240   :  { %1580 = vmatmul.mubr.bf16.vlgmr.msra.gmra.mrb[16].mxu1 %v3634_v0  ;;  %v2651_v0 = vld [vmem:[%s4061_s5 + $0x8] sm:$0xff]  }
 0x241   :  { %1589 = vmatprep.mubr.bf16.mxu1 %v3587_v22  ;;  %1621 = vmatpush1.bf16.msra.mxu1 %v3639_v25  ;;  %v2648_v22 = vld [vmem:[%s4061_s5 + $0x40] sm:$0xff]   ;;  %v2652_v25 = vld [vmem:[%s4061_s5 + $0x50] sm:$0xff]  }
 0x242   :  { %1622 = vmatprep.subr.bf16.mxu1 %v3644_v47 }
 0x245   :  { %1623 = vmatpush1.bf16.msra.mxu1 %v3656_v10 }
 0x246   :  { %1624 = vmatprep.subr.bf16.mxu1 %v3663_v26 }
 0x248   :  { %1590 = vmatmul.mubr.bf16.gmra.mrb[20].mxu1 %v3667_v53 }
 0x249   :  { %1599 = vmatprep.mubr.bf16.mxu1 %v3595_v7  ;;  %1625 = vmatpush1.bf16.msra.mxu1 %v3674_v13  ;;  %v2649_v7 = vld [vmem:[%s4061_s5] sm:$0xff]  }
 0x24a   :  { %1626 = vmatprep.subr.bf16.mxu1 %v3680_v23 }
 0x24d   :  { %1627 = vmatpush1.bf16.msra.mxu1 %v3692_v12 }
 0x24e   :  { %1628 = vmatprep.subr.bf16.mxu1 %v3699_v60 }
 0x250   :  { %1600 = vmatmul.mubr.bf16.gmra.mrb[24].mxu1 %v3703_v30 }
 0x251   :  { %1609 = vmatprep.mubr.bf16.mxu1 %v3600_v3  ;;  %1629 = vmatpush1.bf16.msra.mxu1 %v3710_v24  ;;  %v2650_v3 = vld [vmem:[%s4061_s5 + $0x48] sm:$0xff]  }
 0x252   :  { %1630 = vmatprep.subr.bf16.mxu1 %v3716_v63 }
 0x255   :  { %1631 = vmatpush1.bf16.msra.mxu1 %v3728_v31 }
 0x256   :  { %1632 = vmatprep.subr.bf16.mxu1 %v3735_v59 }
 0x258   :  { %1610 = vmatmul.mubr.bf16.gmra.mrb[28].mxu1 %v3741_v39 }
 0x259   :  { %1633 = vmatpush1.bf16.msra.mxu1 %v3746_v6  ;;  %1652 = vmatprep.mubr.bf16.mxu1 %v2692_v62 }
 0x25a   :  { %1634 = vmatprep.subr.bf16.mxu1 %v3752_v61 }
 0x25d   :  { %1635 = vmatpush1.bf16.msra.mxu1 %v3762_v20 }
 0x25e   :  { %2373 = vmatprep.subr.bf16.mxu1 %v2648_v22  ;;  %v2664_v22 = vld [vmem:[%s4061_s5 + $0x70] sm:$0xff]  }
 0x260   :  { %1653 = vmatmul.mubr.bf16.vlgmr.msra.gmra.mrb[16].mxu1 %v3667_v53 }
 0x261   :  { %1662 = vmatprep.mubr.bf16.mxu1 %v2692_v62  ;;  %2374 = vmatpush3.bf16.msra.mxu1 %v2649_v7  ;;  %v2665_v7 = vld [vmem:[%s4061_s5 + $0xd0] sm:$0xff]  }
 0x262   :  { %2375 = vmatprep.subr.bf16.mxu1 %v2650_v3  ;;  %v2666_v3 = vld [vmem:[%s4061_s5 + $0x30] sm:$0xff]   ;;  %2399 = vmatprep.subr.bf16.mxu0 %v2665_v7 }
 0x265   :  { %2376 = vmatpush3.bf16.msra.mxu1 %v2651_v0  ;;  %v2667_v0 = vld [vmem:[%s4061_s5 + $0x90] sm:$0xff]  }
 0x266   :  { %2377 = vmatprep.subr.bf16.mxu1 %v2652_v25  ;;  %2400 = vmatpush3.bf16.msra.mxu0 %v2667_v0  ;;  %v2668_v25 = vld [vmem:[%s4061_s5 + $0x78] sm:$0xff]  }
 0x268   :  { %1663 = vmatmul.mubr.bf16.gmra.mrb[20].mxu1 %v3703_v30 }
 0x269   :  { %1672 = vmatprep.mubr.bf16.mxu1 %v2692_v62  ;;  %2378 = vmatpush3.bf16.msra.mxu1 %v2653_v35 }
 0x26a   :  { %2379 = vmatprep.subr.bf16.mxu1 %v2654_v37 }
 0x26b   :  { %v1289_v47 = vpop.f32.mrb[96].mxu0 }
 0x26c   :  { %v1291_v10 = vpop.f32.mrb[97].mxu0 }
 0x26d   :  { %v1293_v26 = vpop.f32.mrb[98].mxu0  ;;  %2380 = vmatpush3.bf16.msra.mxu1 %v2655_v36 }
 0x26e   :  { %v1295_v53 = vpop.f32.mrb[99].mxu0  ;;  %2381 = vmatprep.subr.bf16.mxu1 %v2656_v38 }
 0x270   :  { %1673 = vmatmul.mubr.bf16.gmra.mrb[24].mxu1 %v3741_v39 }
 0x271   :  { %1682 = vmatprep.mubr.bf16.mxu1 %v2692_v62  ;;  %2382 = vmatpush3.bf16.msra.mxu1 %v2658_v41 }
 0x272   :  { %2383 = vmatprep.subr.bf16.mxu1 %v2660_v44 }
 0x273   :  { %v1299_v13 = vpop.f32.mrb[100].mxu0 }
 0x274   :  { %v1301_v23 = vpop.f32.mrb[101].mxu0 }
 0x275   :  { %v1303_v12 = vpop.f32.mrb[102].mxu0  ;;  %2384 = vmatpush3.bf16.msra.mxu1 %v2662_v48 }
 0x276   :  { %v1305_v60 = vpop.f32.mrb[103].mxu0  ;;  %2385 = vmatprep.subr.bf16.mxu1 %v2664_v22 }
 0x278   :  { %1683 = vmatmul.mubr.bf16.gmra.mrb[28].mxu1 %v3767_v14 }
 0x279   :  { %2386 = vmatpush3.bf16.msra.mxu1 %v2666_v3 }
 0x27a   :  { %2387 = vmatprep.subr.bf16.mxu1 %v2668_v25 }
 0x27b   :  { %v1309_v24 = vpop.f32.mrb[104].mxu0 }
 0x27c   :  { %v1311_v63 = vpop.f32.mrb[105].mxu0 }
 0x27d   :  { %v1313_v31 = vpop.f32.mrb[106].mxu0 }
 0x27e   :  { %v1315_v30 = vpop.f32.mrb[107].mxu0 }
 0x283   :  { %v1319_v59 = vpop.f32.mrb[108].mxu0 }
 0x284   :  { %v1321_v6 = vpop.f32.mrb[109].mxu0 }
 0x285   :  { %v1323_v61 = vpop.f32.mrb[110].mxu0 }
 0x286   :  { %v1325_v20 = vpop.f32.mrb[111].mxu0 }
 0x293   :  { %v1435_v52 = vpop.f32.mrb[0].mxu1 }
 0x294   :  { %v3895_v54 = vadd.f32 %v1435_v52, %v1289_v47  ;;  %v1437_v39 = vpop.f32.mrb[1].mxu1  ;;  %v2669_v47 = vld [vmem:[%s4061_s5 + $0xd8] sm:$0xff]   ;;  %v2333_v52 = vld [vmem:[%s4062_s4] ss:$0 sm:$0xff] }
 0x295   :  { %v3897_v56 = vadd.f32 %v1437_v39, %v1291_v10  ;;  %v1439_v62 = vpop.f32.mrb[2].mxu1  ;;  %v2670_v10 = vld [vmem:[%s4061_s5 + $0x38] sm:$0xff]   ;;  %2401 = vmatprep.subr.bf16.mxu0 %v2669_v47 }
 0x296   :  { %v3899_v57 = vadd.f32 %v1439_v62, %v1293_v26  ;;  %v1441_v33 = vpop.f32.mrb[3].mxu1  ;;  %v2671_v26 = vld [vmem:[%s4061_s5 + $0x98] sm:$0xff]   ;;  %2388 = vmatpush3.bf16.msra.mxu1 %v2670_v10 }
 0x297   :  { %v3901_v11 = vadd.f32 %v1441_v33, %v1295_v53  ;;  %2402 = vmatpush3.bf16.msra.mxu0 %v2671_v26  ;;  %v2672_v53 = vld [vmem:[%s4061_s5 + $0xe0] sm:$0xff]  }
 0x298   :  { %2403 = vmatprep.subr.bf16.mxu0 %v2672_v53 }
 0x29b   :  { %v1445_v14 = vpop.f32.mrb[4].mxu1 }
 0x29c   :  { %v3903_v50 = vadd.f32 %v1445_v14, %v1299_v13  ;;  %v1447_v27 = vpop.f32.mrb[5].mxu1  ;;  %v2673_v13 = vld [vmem:[%s4061_s5 + $0xa0] sm:$0xff]  }
 0x29d   :  { %v3905_v43 = vadd.f32 %v1447_v27, %v1301_v23  ;;  %v1449_v16 = vpop.f32.mrb[6].mxu1  ;;  %2404 = vmatpush3.bf16.msra.mxu0 %v2673_v13  ;;  %v2674_v23 = vld [vmem:[%s4061_s5 + $0xe8] sm:$0xff]  }
 0x29e   :  { %v3907_v8 = vadd.f32 %v1449_v16, %v1303_v12  ;;  %v1451_v15 = vpop.f32.mrb[7].mxu1  ;;  %v2675_v12 = vld [vmem:[%s4061_s5 + $0xa8] sm:$0xff]   ;;  %2405 = vmatprep.subr.bf16.mxu0 %v2674_v23 }
 0x29f   :  { %v3909_v19 = vadd.f32 %v1451_v15, %v1305_v60  ;;  %v2676_v60 = vld [vmem:[%s4061_s5 + $0xf0] sm:$0xff]  }
 0x2a1   :  { %2406 = vmatpush3.bf16.msra.mxu0 %v2675_v12 }
 0x2a2   :  { %2407 = vmatprep.subr.bf16.mxu0 %v2676_v60 }
 0x2a3   :  { %v1455_v55 = vpop.f32.mrb[8].mxu1 }
 0x2a4   :  { %v3911_v28 = vadd.f32 %v1455_v55, %v1309_v24  ;;  %v1457_v17 = vpop.f32.mrb[9].mxu1  ;;  %v2677_v24 = vld [vmem:[%s4061_s5 + $0xb0] sm:$0xff]  }
 0x2a5   :  { %v3913_v2 = vadd.f32 %v1457_v17, %v1311_v63  ;;  %v1459_v32 = vpop.f32.mrb[10].mxu1  ;;  %2408 = vmatpush3.bf16.msra.mxu0 %v2677_v24  ;;  %v2678_v63 = vld [vmem:[%s4061_s5 + $0xf8] sm:$0xff]  }
 0x2a6   :  { %v3915_v4 = vadd.f32 %v1459_v32, %v1313_v31  ;;  %v1461_v45 = vpop.f32.mrb[11].mxu1  ;;  %v2679_v31 = vld [vmem:[%s4061_s5 + $0xb8] sm:$0xff]   ;;  %2409 = vmatprep.subr.bf16.mxu0 %v2678_v63 }
 0x2a7   :  { %v3917_v18 = vadd.f32 %v1461_v45, %v1315_v30 }
 0x2a9   :  { %2410 = vmatpush3.bf16.msra.mxu0 %v2679_v31 }
 0x2ab   :  { %v1465_v5 = vpop.f32.mrb[12].mxu1 }
 0x2ac   :  { %v3919_v21 = vadd.f32 %v1465_v5, %v1319_v59  ;;  %v1467_v29 = vpop.f32.mrb[13].mxu1 }
 0x2ad   :  { %v3921_v51 = vadd.f32 %v1467_v29, %v1321_v6  ;;  %v1469_v58 = vpop.f32.mrb[14].mxu1 }
 0x2ae   :  { %v3923_v9 = vadd.f32 %v1469_v58, %v1323_v61  ;;  %v1471_v1 = vpop.f32.mrb[15].mxu1 }
 0x2af   :  { %v3925_v34 = vadd.f32 %v1471_v1, %v1325_v20 }
 0x333   :  { %v1654_v30 = vpop.f32.mrb[16].mxu1 }
 0x334   :  { %v1693_v59 = vmax.f32 %v3895_v54, %v1654_v30  ;;  %v1656_v6 = vpop.f32.mrb[17].mxu1 }
 0x335   :  { %v1694_v61 = vmax.f32 %v3897_v56, %v1656_v6  ;;  %v1658_v20 = vpop.f32.mrb[18].mxu1 }
 0x336   :  { %v1695_v39 = vmax.f32 %v3899_v57, %v1658_v20  ;;  %v1660_v62 = vpop.f32.mrb[19].mxu1 }
 0x337   :  { %v1709_v33 = vmax.f32 %v1693_v59, %v1694_v61  ;;  %v1696_v14 = vmax.f32 %v3901_v11, %v1660_v62  ;;  %v2683_v59 = vld [vmem:[%s4063_s7 + $0x18] ss:$0 sps:$4 sm:$0x11]  }
 0x338   :  { %v2133_v6 = vsel %vm2131_vm2, %v2683_v59, 0 }
 0x339   :  { %v1724_v27 = vadd.f32 %v2333_v52, %v1709_v33  ;;  %v1710_v16 = vmax.f32 %v1695_v39, %v1696_v14  ;;  %v2334_v14 = vld [vmem:[%s4064_s6] ss:$0 sm:$0xff] }
 0x33b   :  { %v1725_v15 = vadd.f32 %v2333_v52, %v1710_v16  ;;  %v1664_v55 = vpop.f32.mrb[20].mxu1  ;;  %v1732_v32 = vmax.f32 %v1724_v27, 0.0 }
 0x33c   :  { %v1697_v54 = vmax.f32 %v3903_v50, %v1664_v55  ;;  %v1666_v17 = vpop.f32.mrb[21].mxu1 }
 0x33d   :  { %v1733_v56 = vmax.f32 %v1725_v15, 0.0  ;;  %v1698_v45 = vmax.f32 %v3905_v43, %v1666_v17  ;;  %v1668_v5 = vpop.f32.mrb[22].mxu1 }
 0x33e   :  { %v1699_v29 = vmax.f32 %v3907_v8, %v1668_v5  ;;  %v1670_v58 = vpop.f32.mrb[23].mxu1 }
 0x33f   :  { %v1740_v57 = vpack.c.bf16 %v1733_v56, %v1732_v32  ;;  %v1711_v1 = vmax.f32 %v1697_v54, %v1698_v45  ;;  %v1700_v35 = vmax.f32 %v3909_v19, %v1670_v58 }
 0x341   :  { %v1726_v11 = vadd.f32 %v2333_v52, %v1711_v1  ;;  %v1712_v37 = vmax.f32 %v1699_v29, %v1700_v35  ;;  %v2367_v1 = vld [vmem:[%s4065_s8] ss:$0 sm:$0xff] }
 0x343   :  { %v1727_v36 = vadd.f32 %v2333_v52, %v1712_v37  ;;  %v1674_v38 = vpop.f32.mrb[24].mxu1  ;;  %v1734_v41 = vmax.f32 %v1726_v11, 0.0 }
 0x344   :  { %v1701_v40 = vmax.f32 %v3911_v28, %v1674_v38  ;;  %v1676_v50 = vpop.f32.mrb[25].mxu1 }
 0x345   :  { %v1735_v42 = vmax.f32 %v1727_v36, 0.0  ;;  %v1702_v44 = vmax.f32 %v3913_v2, %v1676_v50  ;;  %v1678_v43 = vpop.f32.mrb[26].mxu1 }
 0x346   :  { %v1703_v46 = vmax.f32 %v3915_v4, %v1678_v43  ;;  %v1680_v8 = vpop.f32.mrb[27].mxu1 }
 0x347   :  { %v1713_v48 = vmax.f32 %v1701_v40, %v1702_v44  ;;  %v1704_v49 = vmax.f32 %v3917_v18, %v1680_v8  ;;  %v1741_v22 = vpack.c.bf16 %v1735_v42, %v1734_v41 }
 0x349   :  { %v1728_v19 = vadd.f32 %v2333_v52, %v1713_v48  ;;  %v1714_v7 = vmax.f32 %v1703_v46, %v1704_v49  ;;  %2039 = vmatprep.mubr.bf16.mxu1 %v1741_v22 }
 0x34a   :  { %2040 = vmatmul.mubr.bf16.vlgmr.msra.gmra.mrb[32].mxu1 %v1740_v57 }
 0x34b   :  { %v1729_v3 = vadd.f32 %v2333_v52, %v1714_v7  ;;  %v1684_v0 = vpop.f32.mrb[28].mxu1  ;;  %v1736_v47 = vmax.f32 %v1728_v19, 0.0 }
 0x34c   :  { %v1705_v28 = vmax.f32 %v3919_v21, %v1684_v0  ;;  %v1686_v25 = vpop.f32.mrb[29].mxu1  ;;  %v2693_v21 = vmov 0.0  }
 0x34d   :  { %v1737_v10 = vmax.f32 %v1729_v3, 0.0  ;;  %v1706_v2 = vmax.f32 %v3921_v51, %v1686_v25  ;;  %v1688_v26 = vpop.f32.mrb[30].mxu1  ;;  %2422 = vmatprep.subr.bf16.mxu0 %v2693_v21  ;;  %v2680_v51 = vld [vmem:[%s4063_s7] sm:$0xff]  }
 0x34e   :  { %v1707_v4 = vmax.f32 %v3923_v9, %v1688_v26  ;;  %v1690_v53 = vpop.f32.mrb[31].mxu1  ;;  %v2681_v9 = vld [vmem:[%s4063_s7 + $0x8] sm:$0xff]  }
 0x34f   :  { %v1742_v13 = vpack.c.bf16 %v1737_v10, %v1736_v47  ;;  %v1715_v18 = vmax.f32 %v1705_v28, %v1706_v2  ;;  %v1708_v23 = vmax.f32 %v3925_v34, %v1690_v53  ;;  %v2682_v34 = vld [vmem:[%s4063_s7 + $0x10] sm:$0xff]  }
 0x351   :  { %v1730_v12 = vadd.f32 %v2333_v52, %v1715_v18  ;;  %v1716_v60 = vmax.f32 %v1707_v4, %v1708_v23 }
 0x353   :  { %v1731_v24 = vadd.f32 %v2333_v52, %v1716_v60  ;;  %v1738_v63 = vmax.f32 %v1730_v12, 0.0 }
 0x355   :  { %v1739_v31 = vmax.f32 %v1731_v24, 0.0 }
 0x357   :  { %v1743_v30 = vpack.c.bf16 %v1739_v31, %v1738_v63 }
 0x359   :  { %2080 = vmatprep.mubr.bf16.mxu0 %v1743_v30 }
 0x35a   :  { %2081 = vmatmul.mubr.bf16.vlgmr.msra.gmra.mrb[112].mxu0 %v1742_v13 }
 0x35b   :  { %2423 = vmatpush3.bf16.msra.mxu0 %v2680_v51  ;;  %2430 = vmatprep.mubr.msk.bf16.mxu0 %vm2694_vm3, %v2693_v21 }
 0x35c   :  { %2424 = vmatprep.subr.bf16.mxu0 %v2693_v21 }
 0x35f   :  { %2425 = vmatpush3.bf16.msra.mxu0 %v2681_v9 }
 0x360   :  { %2426 = vmatprep.subr.bf16.mxu0 %v2693_v21 }
 0x363   :  { %2427 = vmatpush3.bf16.msra.mxu0 %v2682_v34 }
 0x364   :  { %2428 = vmatprep.subr.bf16.mxu0 %v2693_v21 }
 0x367   :  { %2429 = vmatpush3.bf16.msra.mxu0 %v2133_v6 }
 0x41d   :  { %v2389_v61 = vpop.f32.mrb[32].mxu1 }
 0x41e   :  { %v2390_v20 = vpop.f32.mrb[33].mxu1 }
 0x41f   :  { %v2391_v52 = vadd.f32 %v2390_v20, %v2389_v61  ;;  %v2392_v39 = vpop.f32.mrb[34].mxu1 }
 0x420   :  { %v2393_v62 = vpop.f32.mrb[35].mxu1 }
 0x421   :  { %v2394_v33 = vadd.f32 %v2393_v62, %v2392_v39  ;;  %v2042_v15 = vadd.f32 %v2391_v52, %v2334_v14 }
 0x423   :  { %v2045_v32 = vadd.f32 %v2394_v33, %v2334_v14 }
 0x42d   :  { %v2411_v27 = vpop.f32.mrb[112].mxu0 }
 0x42e   :  { %v2412_v16 = vpop.f32.mrb[113].mxu0 }
 0x42f   :  { %v2413_v55 = vadd.f32 %v2412_v16, %v2411_v27  ;;  %v2414_v54 = vpop.f32.mrb[114].mxu0 }
 0x430   :  { %v2415_v17 = vpop.f32.mrb[115].mxu0 }
 0x431   :  { %v2083_v56 = vadd.f32 %v2413_v55, %v2042_v15  ;;  %v2416_v45 = vadd.f32 %v2415_v17, %v2414_v54 }
 0x433   :  { %v2086_v5 = vadd.f32 %v2416_v45, %v2045_v32  ;;  %v2089_v29 = vmax.f32 %v2083_v56, 0.0 }
 0x435   :  { %v2090_v58 = vmax.f32 %v2086_v5, 0.0 }
 0x437   :  { %v2091_v57 = vpack.c.bf16 %v2090_v58, %v2089_v29 }
 0x439   :  { %2431 = vmatmul.mubr.msk.bf16.vlgmr.msra.gmra.mrb[116].mxu0 %vm2127_vm4, %v2091_v57 }
 0x50c   :  { %v2169_v35 = vpop.f32.mrb[116].mxu0 }
 0x50d   :  { %v2170_v11 = vadd.f32 %v2367_v1, %v2169_v35  ;;  %v2432_v37 = vpop.f32.mrb[117].mxu0 }
 0x50e   :  { %v2172_v36 = vpop.f32.mrb[118].mxu0 }
 0x50f   :  { %v2173_v38 = vadd.f32 %v2367_v1, %v2172_v36  ;;  %v2433_v40 = vpop.f32.mrb[119].mxu0  ;;  %v2177_v50 = vsel %vm2176_vm5, %v2170_v11, -inf }
 0x510   :  { %2178 = vmax.xlane.f32.xlu0 %v2177_v50 }
 0x511   :  { %v2180_v41 = vsel %vm2176_vm5, %v2173_v38, -inf }
 0x514   :  { %2181 = vmax.xlane.f32.xlu0 %v2180_v41 }
 0x59d   :  { %v2179_v42 = vpop.xlane.xlu0 %2178 }
 0x59e   :  { %v2183_v44 = vsub.f32 %v2170_v11, %v2179_v42 }
 0x5a0   :  { %v2185_v43 = vmul.f32 1.442695, %v2183_v44 }
 0x5a1   :  { %v2182_v46 = vpop.xlane.xlu0 %2181 }
 0x5a2   :  { %2684 = vpow2.f32 %v2185_v43  ;;  %v2184_v8 = vsub.f32 %v2173_v38, %v2182_v46 }
 0x5a4   :  { %v2187_v48 = vmul.f32 1.442695, %v2184_v8 }
 0x5a6   :  { %2686 = vpow2.f32 %v2187_v48 }
 0x5ac   :  { %v2685_v49 = vpop.eup %2684 }
 0x5ad   :  { %v2189_v22 = vsel %vm2176_vm5, %v2685_v49, 0.0 }
 0x5ae   :  { %2190 = vadd.xlane.f32.xlu1 %v2189_v22 }
 0x5b0   :  { %v2687_v19 = vpop.eup %2686 }
 0x5b1   :  { %v2192_v7 = vsel %vm2176_vm5, %v2687_v19, 0.0 }
 0x5b2   :  { %2193 = vadd.xlane.f32.xlu1 %v2192_v7 }
 0x63b   :  { %v2191_v3 = vpop.xlane.xlu1 %2190 }
 0x63c   :  { %2688 = vlog2.f32 %v2191_v3 }
 0x63f   :  { %v2194_v0 = vpop.xlane.xlu1 %2193 }
 0x640   :  { %2690 = vlog2.f32 %v2194_v0 }
 0x646   :  { %v2689_v28 = vpop.eup %2688 }
 0x647   :  { %v2196_v25 = vmul.f32 0.6931472, %v2689_v28 }
 0x649   :  { %v2199_v47 = vadd.f32 %v2196_v25, %v2179_v42 }
 0x64a   :  { %v2691_v10 = vpop.eup %2690 }
 0x64b   :  { %v2201_v2 = vsub.f32 %v2170_v11, %v2199_v47  ;;  %v2198_v26 = vmul.f32 0.6931472, %v2691_v10 }
 0x64d   :  { %2203 = vst.msk [vmem:[%s4066_s9] sm:$0xff] %vm2176_vm5, %v2201_v2  ;;  %v2200_v4 = vadd.f32 %v2198_v26, %v2182_v46 }
 0x64f   :  { %v2202_v53 = vsub.f32 %v2173_v38, %v2200_v4 }
 0x651   :  { %2204 = vst.msk [vmem:[%s4066_s9 + $0x8] sm:$0xff] %vm2176_vm5, %v2202_v53 }

</bundles_post_ra>
